<compile_context>
chip_gen: v7x
topology: tpu7x:2x2x1
jax: 0.10.0
libtpu: 0.0.40
codegen_flags: <defaults>
</compile_context>

<pallas_src>
import math

import jax
import jax.numpy as jnp
from jax import lax
from jax.experimental import pallas as pl
from jax.experimental.pallas import tpu as pltpu

# ---- synthetic Electra config (small, deterministic) ----
VOCAB = 100
HIDDEN = 32
N_HEADS = 2
HEAD_DIM = HIDDEN // N_HEADS
INTERMEDIATE = 64
N_LAYERS = 2
MAX_POS = 16
TYPE_VOCAB = 2
LN_EPS = 1e-12


# ----------------- in-kernel helpers -----------------
def _layernorm(x, g, b):
    mu = jnp.mean(x, axis=-1, keepdims=True)
    var = jnp.mean(jnp.square(x - mu), axis=-1, keepdims=True)
    return (x - mu) * lax.rsqrt(var + LN_EPS) * g + b


def _gelu(x):
    # TODO(synk): HF Electra default is exact erf-GELU; tanh approximation used here.
    c = math.sqrt(2.0 / math.pi)
    return 0.5 * x * (1.0 + jnp.tanh(c * (x + 0.044715 * x * x * x)))


# ----------------- fused Pallas kernel -----------------
def electra_fused_kernel(x_ref, mask_ref, embln_ref,
                         wqkv_ref, bqkv_ref, wo_ref,
                         w1_ref, b1_ref, w2_ref, vecs_ref,
                         logits_ref):
    """Entire Electra forward for one small batch; single invocation, no grid.

    Shapes (f32):
      x_ref     (B*S, H)        flattened embeddings (word+pos+type)
      mask_ref  (B*S, B*S)      block-diagonal additive attention mask
      embln_ref (2, H)          [emb LN gamma; emb LN beta]
      wqkv_ref  (L, H, 3*H)     packed [Q|K|V] weights (scale folded into Q)
      bqkv_ref  (L, 1, 3*H)     packed [Q|K|V] biases  (scale folded into Q)
      wo_ref    (L, H, H)       attention output projection
      w1_ref    (L, H, I)   b1_ref (L, 1, I)   w2_ref (L, I, H)
      vecs_ref  (L, 6, H)       rows: bo, g1, be1, b2, g2, be2
      logits_ref (B, H)         CLS hidden states (output)
    """
    BS = x_ref.shape[0]
    B = logits_ref.shape[0]
    S = BS // B

    mask = mask_ref[...]                                         # hoisted, reused per head
    x = _layernorm(x_ref[...], embln_ref[0:1, :], embln_ref[1:2, :])

    for l in range(N_LAYERS):
        vecs = vecs_ref[l]                                       # (6, H)

        # ---- fused QKV projection: one 96-lane matmul + one bias add ----
        qkv = jnp.dot(x, wqkv_ref[l],
                      preferred_element_type=jnp.float32) + bqkv_ref[l]   # (BS, 3H)

        # ---- attention: one (BS,BS) score matmul / softmax / PV per head ----
        ctx_heads = []
        for n in range(N_HEADS):
            lo = n * HEAD_DIM
            q = qkv[:, lo:lo + HEAD_DIM]                          # scale already folded in
            k = qkv[:, HIDDEN + lo:HIDDEN + lo + HEAD_DIM]
            v = qkv[:, 2 * HIDDEN + lo:2 * HIDDEN + lo + HEAD_DIM]
            s = lax.dot_general(q, k, (((1,), (1,)), ((), ())),
                                preferred_element_type=jnp.float32) + mask   # (BS, BS)
            s = s - jnp.max(s, axis=-1, keepdims=True)
            p = jnp.exp(s)
            p = p * pl.reciprocal(jnp.sum(p, axis=-1, keepdims=True), approx=True)
            ctx_heads.append(jnp.dot(p, v, preferred_element_type=jnp.float32))  # (BS, D)
        ctx = jnp.concatenate(ctx_heads, axis=-1)                 # (BS, H)

        # ---- fused output projection + post-attention LN ----
        attn = jnp.dot(ctx, wo_ref[l],
                       preferred_element_type=jnp.float32) + vecs[0:1]       # + bo
        h1 = _layernorm(x + attn, vecs[1:2], vecs[2:3])

        # ---- GELU FFN + post-FFN LN (full-slab matmuls) ----
        ff_in = jnp.dot(h1, w1_ref[l], preferred_element_type=jnp.float32) + b1_ref[l]
        ff = jnp.dot(_gelu(ff_in), w2_ref[l],
                     preferred_element_type=jnp.float32) + vecs[3:4]
        x = _layernorm(h1 + ff, vecs[4:5], vecs[5:6])

    # ---- mode='cls' logits ----
    logits_ref[...] = jnp.concatenate([x[b * S:b * S + 1, :] for b in range(B)], axis=0)


# ----------------- parameter packing (plain JAX glue, done once per call) -----------------
def pack_params(params):
    layers = params['layers']
    scale = 1.0 / math.sqrt(HEAD_DIM)
    # [Q|K|V] packed along lanes; attention scale folded into the Q columns/bias.
    wqkv = jnp.stack([jnp.concatenate([lp['wq'] * scale, lp['wk'], lp['wv']], axis=-1)
                      for lp in layers])                                  # (L, H, 3H)
    bqkv = jnp.stack([jnp.concatenate([lp['bq'] * scale, lp['bk'], lp['bv']])[None, :]
                      for lp in layers])                                  # (L, 1, 3H)
    wo = jnp.stack([lp['wo'] for lp in layers])                           # (L, H, H)
    w1 = jnp.stack([lp['w1'] for lp in layers])                           # (L, H, I)
    b1 = jnp.stack([lp['b1'] for lp in layers])[:, None, :]               # (L, 1, I)
    w2 = jnp.stack([lp['w2'] for lp in layers])                           # (L, I, H)
    vecs = jnp.stack([jnp.stack([lp['bo'], lp['g1'], lp['be1'],
                                 lp['b2'], lp['g2'], lp['be2']]) for lp in layers])  # (L, 6, H)
    embln = jnp.stack([params['emb_g'], params['emb_b']])                 # (2, H)
    return dict(wqkv=wqkv, bqkv=bqkv, wo=wo, w1=w1, b1=b1, w2=w2,
                vecs=vecs, embln=embln)


# ----------------- model -----------------
def init_params(key):
    keys = iter(jax.random.split(key, 8 + N_LAYERS * 8))

    def nrm(shape):
        return jax.random.normal(next(keys), shape, jnp.float32) * 0.02

    params = {
        'word_emb': nrm((VOCAB, HIDDEN)),
        'pos_emb': nrm((MAX_POS, HIDDEN)),
        'type_emb': nrm((TYPE_VOCAB, HIDDEN)),
        'emb_g': jnp.ones((HIDDEN,), jnp.float32),
        'emb_b': jnp.zeros((HIDDEN,), jnp.float32),
        'dense_w': nrm((HIDDEN, 1)),            # task='ranking' -> Linear(H, 1)
        'dense_b': jnp.zeros((1,), jnp.float32),
        'layers': [],
    }
    for _ in range(N_LAYERS):
        params['layers'].append({
            'wq': nrm((HIDDEN, HIDDEN)), 'bq': jnp.zeros((HIDDEN,), jnp.float32),
            'wk': nrm((HIDDEN, HIDDEN)), 'bk': jnp.zeros((HIDDEN,), jnp.float32),
            'wv': nrm((HIDDEN, HIDDEN)), 'bv': jnp.zeros((HIDDEN,), jnp.float32),
            'wo': nrm((HIDDEN, HIDDEN)), 'bo': jnp.zeros((HIDDEN,), jnp.float32),
            'g1': jnp.ones((HIDDEN,), jnp.float32), 'be1': jnp.zeros((HIDDEN,), jnp.float32),
            'w1': nrm((HIDDEN, INTERMEDIATE)), 'b1': jnp.zeros((INTERMEDIATE,), jnp.float32),
            'w2': nrm((INTERMEDIATE, HIDDEN)), 'b2': jnp.zeros((HIDDEN,), jnp.float32),
            'g2': jnp.ones((HIDDEN,), jnp.float32), 'be2': jnp.zeros((HIDDEN,), jnp.float32),
        })
    return params


def electra_forward(params, input_ids, input_mask=None, segment_ids=None):
    B, S = input_ids.shape
    if input_mask is None:
        input_mask = jnp.ones((B, S), jnp.int32)
    if segment_ids is None:
        segment_ids = jnp.zeros((B, S), jnp.int32)

    # embeddings (glue: gathers); embedding LayerNorm happens inside the fused kernel
    emb = (params['word_emb'][input_ids]
           + params['pos_emb'][jnp.arange(S)][None, :, :]
           + params['type_emb'][segment_ids]).astype(jnp.float32)
    x2 = emb.reshape(B * S, HIDDEN)                               # batch folded into rows

    # Block-diagonal additive attention mask over the folded (B*S) axis:
    # off-diagonal batch blocks get -1e9 so sequences never attend across batch rows;
    # the padding mask is folded into the key columns of each diagonal block.
    col_pad = ((1.0 - input_mask.astype(jnp.float32)) * -1e9).reshape(1, B * S)
    batch_ids = jnp.repeat(jnp.arange(B), S)
    same_batch = batch_ids[:, None] == batch_ids[None, :]
    mask2d = jnp.where(same_batch,
                       jnp.broadcast_to(col_pad, (B * S, B * S)),
                       jnp.float32(-1e9))

    pk = pack_params(params)

    vmem = pl.BlockSpec(memory_space=pltpu.MemorySpace.VMEM)      # whole-array VMEM blocks
    logits = pl.pallas_call(
        electra_fused_kernel,
        out_shape=jax.ShapeDtypeStruct((B, HIDDEN), jnp.float32),
        in_specs=[vmem] * 10,
        out_specs=vmem,
    )(x2, mask2d, pk['embln'], pk['wqkv'], pk['bqkv'], pk['wo'],
      pk['w1'], pk['b1'], pk['w2'], pk['vecs'])

    # task='ranking' head: trivial (B,H)x(H,1) dot, plain JAX glue outside the kernel.
    score = (logits @ params['dense_w'] + params['dense_b'])[:, 0]
    return score, logits                                          # (score, logits)


# ----------------- main -----------------
if __name__ == "__main__":
    key = jax.random.PRNGKey(0)
    pkey, ikey = jax.random.split(key, 2)
    params = init_params(pkey)

    B, S = 2, 8
    input_ids = jax.random.randint(ikey, (B, S), 0, VOCAB, dtype=jnp.int32)
    input_mask = jnp.ones((B, S), jnp.int32).at[1, -2:].set(0)     # some padding on row 1
    segment_ids = jnp.zeros((B, S), jnp.int32).at[:, S // 2:].set(1)

    score, logits = electra_forward(params, input_ids, input_mask, segment_ids)
    (score, logits) = jax.block_until_ready((score, logits))

    assert score.shape == (B,), score.shape
    assert logits.shape == (B, HIDDEN), logits.shape
    assert jnp.all(jnp.isfinite(score)) and jnp.all(jnp.isfinite(logits))
    print("KERNEL_OK")
</pallas_src>

<mosaic_0001>
module attributes {stable_mosaic.version = 11 : i64} {
  func.func @electra_fused_kernel(%arg0: memref<16x32xf32, #tpu.memory_space<vmem>>, %arg1: memref<16x16xf32, #tpu.memory_space<vmem>>, %arg2: memref<2x32xf32, #tpu.memory_space<vmem>>, %arg3: memref<2x32x96xf32, #tpu.memory_space<vmem>>, %arg4: memref<2x1x96xf32, #tpu.memory_space<vmem>>, %arg5: memref<2x32x32xf32, #tpu.memory_space<vmem>>, %arg6: memref<2x32x64xf32, #tpu.memory_space<vmem>>, %arg7: memref<2x1x64xf32, #tpu.memory_space<vmem>>, %arg8: memref<2x64x32xf32, #tpu.memory_space<vmem>>, %arg9: memref<2x6x32xf32, #tpu.memory_space<vmem>>, %arg10: memref<2x32xf32, #tpu.memory_space<vmem>>) attributes {dimension_semantics = [], scalar_prefetch = 0 : i64, scratch_operands = 0 : i64, tpu.core_type = #tpu.core_type<tc>} {
    %c0 = arith.constant 0 : index
    %c0_0 = arith.constant 0 : index
    %0 = vector.load %arg1[%c0, %c0_0] : memref<16x16xf32, #tpu.memory_space<vmem>>, vector<16x16xf32>
    %c0_1 = arith.constant 0 : index
    %c0_2 = arith.constant 0 : index
    %1 = vector.load %arg0[%c0_1, %c0_2] : memref<16x32xf32, #tpu.memory_space<vmem>>, vector<16x32xf32>
    %c0_3 = arith.constant 0 : index
    %c0_4 = arith.constant 0 : index
    %2 = vector.load %arg2[%c0_3, %c0_4] : memref<2x32xf32, #tpu.memory_space<vmem>>, vector<1x32xf32>
    %c1 = arith.constant 1 : index
    %c0_5 = arith.constant 0 : index
    %3 = vector.load %arg2[%c1, %c0_5] : memref<2x32xf32, #tpu.memory_space<vmem>>, vector<1x32xf32>
    %cst = arith.constant dense<0.000000e+00> : vector<16xf32>
    %4 = vector.multi_reduction <add>, %1, %cst [1] : vector<16x32xf32> to vector<16xf32>
    %5 = vector.shape_cast %4 : vector<16xf32> to vector<16x1xf32>
    %cst_6 = arith.constant 3.200000e+01 : f32
    %6 = vector.broadcast %cst_6 : f32 to vector<16x1xf32>
    %7 = arith.divf %5, %6 : vector<16x1xf32>
    %8 = vector.broadcast %7 : vector<16x1xf32> to vector<16x32xf32>
    %9 = arith.subf %1, %8 : vector<16x32xf32>
    %10 = arith.mulf %9, %9 : vector<16x32xf32>
    %cst_7 = arith.constant dense<0.000000e+00> : vector<16xf32>
    %11 = vector.multi_reduction <add>, %10, %cst_7 [1] : vector<16x32xf32> to vector<16xf32>
    %12 = vector.shape_cast %11 : vector<16xf32> to vector<16x1xf32>
    %cst_8 = arith.constant 3.200000e+01 : f32
    %13 = vector.broadcast %cst_8 : f32 to vector<16x1xf32>
    %14 = arith.divf %12, %13 : vector<16x1xf32>
    %15 = vector.broadcast %7 : vector<16x1xf32> to vector<16x32xf32>
    %16 = arith.subf %1, %15 : vector<16x32xf32>
    %cst_9 = arith.constant 9.99999996E-13 : f32
    %17 = vector.broadcast %cst_9 : f32 to vector<16x1xf32>
    %18 = arith.addf %14, %17 : vector<16x1xf32>
    %19 = math.rsqrt %18 : vector<16x1xf32>
    %20 = vector.broadcast %19 : vector<16x1xf32> to vector<16x32xf32>
    %21 = arith.mulf %16, %20 : vector<16x32xf32>
    %22 = vector.broadcast %2 : vector<1x32xf32> to vector<16x32xf32>
    %23 = arith.mulf %21, %22 : vector<16x32xf32>
    %24 = vector.broadcast %3 : vector<1x32xf32> to vector<16x32xf32>
    %25 = arith.addf %23, %24 : vector<16x32xf32>
    %c0_10 = arith.constant 0 : index
    %c0_11 = arith.constant 0 : index
    %c0_12 = arith.constant 0 : index
    %26 = vector.load %arg9[%c0_10, %c0_11, %c0_12] : memref<2x6x32xf32, #tpu.memory_space<vmem>>, vector<1x6x32xf32>
    %27 = vector.shape_cast %26 : vector<1x6x32xf32> to vector<6x32xf32>
    %c0_13 = arith.constant 0 : index
    %c0_14 = arith.constant 0 : index
    %c0_15 = arith.constant 0 : index
    %28 = vector.load %arg3[%c0_13, %c0_14, %c0_15] : memref<2x32x96xf32, #tpu.memory_space<vmem>>, vector<1x32x96xf32>
    %29 = vector.shape_cast %28 : vector<1x32x96xf32> to vector<32x96xf32>
    %cst_16 = arith.constant dense<0.000000e+00> : vector<16x96xf32>
    %30 = tpu.matmul %25, %29, %cst_16 {dimension_numbers = #tpu.dot_dimension_numbers<[1], [0], [0], [1], [0, 0, 1, 1], [], []>} : vector<16x32xf32>, vector<32x96xf32>, vector<16x96xf32> -> vector<16x96xf32>
    %c0_17 = arith.constant 0 : index
    %c0_18 = arith.constant 0 : index
    %c0_19 = arith.constant 0 : index
    %31 = vector.load %arg4[%c0_17, %c0_18, %c0_19] : memref<2x1x96xf32, #tpu.memory_space<vmem>>, vector<1x1x96xf32>
    %32 = vector.shape_cast %31 : vector<1x1x96xf32> to vector<1x96xf32>
    %33 = vector.broadcast %32 : vector<1x96xf32> to vector<16x96xf32>
    %34 = arith.addf %30, %33 : vector<16x96xf32>
    %35 = vector.extract_strided_slice %34 {offsets = [0, 0], sizes = [16, 16], strides = [1, 1]} : vector<16x96xf32> to vector<16x16xf32>
    %36 = vector.extract_strided_slice %34 {offsets = [0, 32], sizes = [16, 16], strides = [1, 1]} : vector<16x96xf32> to vector<16x16xf32>
    %37 = vector.extract_strided_slice %34 {offsets = [0, 64], sizes = [16, 16], strides = [1, 1]} : vector<16x96xf32> to vector<16x16xf32>
    %cst_20 = arith.constant dense<0.000000e+00> : vector<16x16xf32>
    %38 = tpu.matmul %35, %36, %cst_20 {dimension_numbers = #tpu.dot_dimension_numbers<[1], [1], [0], [0], [0, 0, 1, 0], [], []>} : vector<16x16xf32>, vector<16x16xf32>, vector<16x16xf32> -> vector<16x16xf32>
    %39 = arith.addf %38, %0 : vector<16x16xf32>
    %cst_21 = arith.constant dense<0xFF800000> : vector<16xf32>
    %40 = vector.multi_reduction <maximumf>, %39, %cst_21 [1] : vector<16x16xf32> to vector<16xf32>
    %41 = vector.shape_cast %40 : vector<16xf32> to vector<16x1xf32>
    %42 = vector.broadcast %41 : vector<16x1xf32> to vector<16x16xf32>
    %43 = arith.subf %39, %42 : vector<16x16xf32>
    %44 = math.exp %43 : vector<16x16xf32>
    %cst_22 = arith.constant dense<0.000000e+00> : vector<16xf32>
    %45 = vector.multi_reduction <add>, %44, %cst_22 [1] : vector<16x16xf32> to vector<16xf32>
    %46 = vector.shape_cast %45 : vector<16xf32> to vector<16x1xf32>
    %47 = tpu.reciprocal %46 {approx = true} : vector<16x1xf32> -> vector<16x1xf32>
    %48 = vector.broadcast %47 : vector<16x1xf32> to vector<16x16xf32>
    %49 = arith.mulf %44, %48 : vector<16x16xf32>
    %cst_23 = arith.constant dense<0.000000e+00> : vector<16x16xf32>
    %50 = tpu.matmul %49, %37, %cst_23 {dimension_numbers = #tpu.dot_dimension_numbers<[1], [0], [0], [1], [0, 0, 1, 1], [], []>} : vector<16x16xf32>, vector<16x16xf32>, vector<16x16xf32> -> vector<16x16xf32>
    %51 = vector.extract_strided_slice %34 {offsets = [0, 16], sizes = [16, 16], strides = [1, 1]} : vector<16x96xf32> to vector<16x16xf32>
    %52 = vector.extract_strided_slice %34 {offsets = [0, 48], sizes = [16, 16], strides = [1, 1]} : vector<16x96xf32> to vector<16x16xf32>
    %53 = vector.extract_strided_slice %34 {offsets = [0, 80], sizes = [16, 16], strides = [1, 1]} : vector<16x96xf32> to vector<16x16xf32>
    %cst_24 = arith.constant dense<0.000000e+00> : vector<16x16xf32>
    %54 = tpu.matmul %51, %52, %cst_24 {dimension_numbers = #tpu.dot_dimension_numbers<[1], [1], [0], [0], [0, 0, 1, 0], [], []>} : vector<16x16xf32>, vector<16x16xf32>, vector<16x16xf32> -> vector<16x16xf32>
    %55 = arith.addf %54, %0 : vector<16x16xf32>
    %cst_25 = arith.constant dense<0xFF800000> : vector<16xf32>
    %56 = vector.multi_reduction <maximumf>, %55, %cst_25 [1] : vector<16x16xf32> to vector<16xf32>
    %57 = vector.shape_cast %56 : vector<16xf32> to vector<16x1xf32>
    %58 = vector.broadcast %57 : vector<16x1xf32> to vector<16x16xf32>
    %59 = arith.subf %55, %58 : vector<16x16xf32>
    %60 = math.exp %59 : vector<16x16xf32>
    %cst_26 = arith.constant dense<0.000000e+00> : vector<16xf32>
    %61 = vector.multi_reduction <add>, %60, %cst_26 [1] : vector<16x16xf32> to vector<16xf32>
    %62 = vector.shape_cast %61 : vector<16xf32> to vector<16x1xf32>
    %63 = tpu.reciprocal %62 {approx = true} : vector<16x1xf32> -> vector<16x1xf32>
    %64 = vector.broadcast %63 : vector<16x1xf32> to vector<16x16xf32>
    %65 = arith.mulf %60, %64 : vector<16x16xf32>
    %cst_27 = arith.constant dense<0.000000e+00> : vector<16x16xf32>
    %66 = tpu.matmul %65, %53, %cst_27 {dimension_numbers = #tpu.dot_dimension_numbers<[1], [0], [0], [1], [0, 0, 1, 1], [], []>} : vector<16x16xf32>, vector<16x16xf32>, vector<16x16xf32> -> vector<16x16xf32>
    %67 = tpu.concatenate %50, %66 in 1 : vector<16x16xf32>, vector<16x16xf32> -> vector<16x32xf32>
    %c0_28 = arith.constant 0 : index
    %c0_29 = arith.constant 0 : index
    %c0_30 = arith.constant 0 : index
    %68 = vector.load %arg5[%c0_28, %c0_29, %c0_30] : memref<2x32x32xf32, #tpu.memory_space<vmem>>, vector<1x32x32xf32>
    %69 = vector.shape_cast %68 : vector<1x32x32xf32> to vector<32x32xf32>
    %cst_31 = arith.constant dense<0.000000e+00> : vector<16x32xf32>
    %70 = tpu.matmul %67, %69, %cst_31 {dimension_numbers = #tpu.dot_dimension_numbers<[1], [0], [0], [1], [0, 0, 1, 1], [], []>} : vector<16x32xf32>, vector<32x32xf32>, vector<16x32xf32> -> vector<16x32xf32>
    %71 = vector.extract_strided_slice %27 {offsets = [0, 0], sizes = [1, 32], strides = [1, 1]} : vector<6x32xf32> to vector<1x32xf32>
    %72 = vector.broadcast %71 : vector<1x32xf32> to vector<16x32xf32>
    %73 = arith.addf %70, %72 : vector<16x32xf32>
    %74 = arith.addf %25, %73 : vector<16x32xf32>
    %75 = vector.extract_strided_slice %27 {offsets = [1, 0], sizes = [1, 32], strides = [1, 1]} : vector<6x32xf32> to vector<1x32xf32>
    %76 = vector.extract_strided_slice %27 {offsets = [2, 0], sizes = [1, 32], strides = [1, 1]} : vector<6x32xf32> to vector<1x32xf32>
    %cst_32 = arith.constant dense<0.000000e+00> : vector<16xf32>
    %77 = vector.multi_reduction <add>, %74, %cst_32 [1] : vector<16x32xf32> to vector<16xf32>
    %78 = vector.shape_cast %77 : vector<16xf32> to vector<16x1xf32>
    %cst_33 = arith.constant 3.200000e+01 : f32
    %79 = vector.broadcast %cst_33 : f32 to vector<16x1xf32>
    %80 = arith.divf %78, %79 : vector<16x1xf32>
    %81 = vector.broadcast %80 : vector<16x1xf32> to vector<16x32xf32>
    %82 = arith.subf %74, %81 : vector<16x32xf32>
    %83 = arith.mulf %82, %82 : vector<16x32xf32>
    %cst_34 = arith.constant dense<0.000000e+00> : vector<16xf32>
    %84 = vector.multi_reduction <add>, %83, %cst_34 [1] : vector<16x32xf32> to vector<16xf32>
    %85 = vector.shape_cast %84 : vector<16xf32> to vector<16x1xf32>
    %cst_35 = arith.constant 3.200000e+01 : f32
    %86 = vector.broadcast %cst_35 : f32 to vector<16x1xf32>
    %87 = arith.divf %85, %86 : vector<16x1xf32>
    %88 = vector.broadcast %80 : vector<16x1xf32> to vector<16x32xf32>
    %89 = arith.subf %74, %88 : vector<16x32xf32>
    %cst_36 = arith.constant 9.99999996E-13 : f32
    %90 = vector.broadcast %cst_36 : f32 to vector<16x1xf32>
    %91 = arith.addf %87, %90 : vector<16x1xf32>
    %92 = math.rsqrt %91 : vector<16x1xf32>
    %93 = vector.broadcast %92 : vector<16x1xf32> to vector<16x32xf32>
    %94 = arith.mulf %89, %93 : vector<16x32xf32>
    %95 = vector.broadcast %75 : vector<1x32xf32> to vector<16x32xf32>
    %96 = arith.mulf %94, %95 : vector<16x32xf32>
    %97 = vector.broadcast %76 : vector<1x32xf32> to vector<16x32xf32>
    %98 = arith.addf %96, %97 : vector<16x32xf32>
    %c0_37 = arith.constant 0 : index
    %c0_38 = arith.constant 0 : index
    %c0_39 = arith.constant 0 : index
    %99 = vector.load %arg6[%c0_37, %c0_38, %c0_39] : memref<2x32x64xf32, #tpu.memory_space<vmem>>, vector<1x32x64xf32>
    %100 = vector.shape_cast %99 : vector<1x32x64xf32> to vector<32x64xf32>
    %cst_40 = arith.constant dense<0.000000e+00> : vector<16x64xf32>
    %101 = tpu.matmul %98, %100, %cst_40 {dimension_numbers = #tpu.dot_dimension_numbers<[1], [0], [0], [1], [0, 0, 1, 1], [], []>} : vector<16x32xf32>, vector<32x64xf32>, vector<16x64xf32> -> vector<16x64xf32>
    %c0_41 = arith.constant 0 : index
    %c0_42 = arith.constant 0 : index
    %c0_43 = arith.constant 0 : index
    %102 = vector.load %arg7[%c0_41, %c0_42, %c0_43] : memref<2x1x64xf32, #tpu.memory_space<vmem>>, vector<1x1x64xf32>
    %103 = vector.shape_cast %102 : vector<1x1x64xf32> to vector<1x64xf32>
    %104 = vector.broadcast %103 : vector<1x64xf32> to vector<16x64xf32>
    %105 = arith.addf %101, %104 : vector<16x64xf32>
    %cst_44 = arith.constant 5.000000e-01 : f32
    %106 = vector.broadcast %cst_44 : f32 to vector<16x64xf32>
    %107 = arith.mulf %106, %105 : vector<16x64xf32>
    %cst_45 = arith.constant 4.471500e-02 : f32
    %108 = vector.broadcast %cst_45 : f32 to vector<16x64xf32>
    %109 = arith.mulf %108, %105 : vector<16x64xf32>
    %110 = arith.mulf %109, %105 : vector<16x64xf32>
    %111 = arith.mulf %110, %105 : vector<16x64xf32>
    %112 = arith.addf %105, %111 : vector<16x64xf32>
    %cst_46 = arith.constant 0.797884583 : f32
    %113 = vector.broadcast %cst_46 : f32 to vector<16x64xf32>
    %114 = arith.mulf %113, %112 : vector<16x64xf32>
    %115 = math.tanh %114 : vector<16x64xf32>
    %cst_47 = arith.constant 1.000000e+00 : f32
    %116 = vector.broadcast %cst_47 : f32 to vector<16x64xf32>
    %117 = arith.addf %116, %115 : vector<16x64xf32>
    %118 = arith.mulf %107, %117 : vector<16x64xf32>
    %c0_48 = arith.constant 0 : index
    %c0_49 = arith.constant 0 : index
    %c0_50 = arith.constant 0 : index
    %119 = vector.load %arg8[%c0_48, %c0_49, %c0_50] : memref<2x64x32xf32, #tpu.memory_space<vmem>>, vector<1x64x32xf32>
    %120 = vector.shape_cast %119 : vector<1x64x32xf32> to vector<64x32xf32>
    %cst_51 = arith.constant dense<0.000000e+00> : vector<16x32xf32>
    %121 = tpu.matmul %118, %120, %cst_51 {dimension_numbers = #tpu.dot_dimension_numbers<[1], [0], [0], [1], [0, 0, 1, 1], [], []>} : vector<16x64xf32>, vector<64x32xf32>, vector<16x32xf32> -> vector<16x32xf32>
    %122 = vector.extract_strided_slice %27 {offsets = [3, 0], sizes = [1, 32], strides = [1, 1]} : vector<6x32xf32> to vector<1x32xf32>
    %123 = vector.broadcast %122 : vector<1x32xf32> to vector<16x32xf32>
    %124 = arith.addf %121, %123 : vector<16x32xf32>
    %125 = arith.addf %98, %124 : vector<16x32xf32>
    %126 = vector.extract_strided_slice %27 {offsets = [4, 0], sizes = [1, 32], strides = [1, 1]} : vector<6x32xf32> to vector<1x32xf32>
    %127 = vector.extract_strided_slice %27 {offsets = [5, 0], sizes = [1, 32], strides = [1, 1]} : vector<6x32xf32> to vector<1x32xf32>
    %cst_52 = arith.constant dense<0.000000e+00> : vector<16xf32>
    %128 = vector.multi_reduction <add>, %125, %cst_52 [1] : vector<16x32xf32> to vector<16xf32>
    %129 = vector.shape_cast %128 : vector<16xf32> to vector<16x1xf32>
    %cst_53 = arith.constant 3.200000e+01 : f32
    %130 = vector.broadcast %cst_53 : f32 to vector<16x1xf32>
    %131 = arith.divf %129, %130 : vector<16x1xf32>
    %132 = vector.broadcast %131 : vector<16x1xf32> to vector<16x32xf32>
    %133 = arith.subf %125, %132 : vector<16x32xf32>
    %134 = arith.mulf %133, %133 : vector<16x32xf32>
    %cst_54 = arith.constant dense<0.000000e+00> : vector<16xf32>
    %135 = vector.multi_reduction <add>, %134, %cst_54 [1] : vector<16x32xf32> to vector<16xf32>
    %136 = vector.shape_cast %135 : vector<16xf32> to vector<16x1xf32>
    %cst_55 = arith.constant 3.200000e+01 : f32
    %137 = vector.broadcast %cst_55 : f32 to vector<16x1xf32>
    %138 = arith.divf %136, %137 : vector<16x1xf32>
    %139 = vector.broadcast %131 : vector<16x1xf32> to vector<16x32xf32>
    %140 = arith.subf %125, %139 : vector<16x32xf32>
    %cst_56 = arith.constant 9.99999996E-13 : f32
    %141 = vector.broadcast %cst_56 : f32 to vector<16x1xf32>
    %142 = arith.addf %138, %141 : vector<16x1xf32>
    %143 = math.rsqrt %142 : vector<16x1xf32>
    %144 = vector.broadcast %143 : vector<16x1xf32> to vector<16x32xf32>
    %145 = arith.mulf %140, %144 : vector<16x32xf32>
    %146 = vector.broadcast %126 : vector<1x32xf32> to vector<16x32xf32>
    %147 = arith.mulf %145, %146 : vector<16x32xf32>
    %148 = vector.broadcast %127 : vector<1x32xf32> to vector<16x32xf32>
    %149 = arith.addf %147, %148 : vector<16x32xf32>
    %c1_57 = arith.constant 1 : index
    %c0_58 = arith.constant 0 : index
    %c0_59 = arith.constant 0 : index
    %150 = vector.load %arg9[%c1_57, %c0_58, %c0_59] : memref<2x6x32xf32, #tpu.memory_space<vmem>>, vector<1x6x32xf32>
    %151 = vector.shape_cast %150 : vector<1x6x32xf32> to vector<6x32xf32>
    %c1_60 = arith.constant 1 : index
    %c0_61 = arith.constant 0 : index
    %c0_62 = arith.constant 0 : index
    %152 = vector.load %arg3[%c1_60, %c0_61, %c0_62] : memref<2x32x96xf32, #tpu.memory_space<vmem>>, vector<1x32x96xf32>
    %153 = vector.shape_cast %152 : vector<1x32x96xf32> to vector<32x96xf32>
    %cst_63 = arith.constant dense<0.000000e+00> : vector<16x96xf32>
    %154 = tpu.matmul %149, %153, %cst_63 {dimension_numbers = #tpu.dot_dimension_numbers<[1], [0], [0], [1], [0, 0, 1, 1], [], []>} : vector<16x32xf32>, vector<32x96xf32>, vector<16x96xf32> -> vector<16x96xf32>
    %c1_64 = arith.constant 1 : index
    %c0_65 = arith.constant 0 : index
    %c0_66 = arith.constant 0 : index
    %155 = vector.load %arg4[%c1_64, %c0_65, %c0_66] : memref<2x1x96xf32, #tpu.memory_space<vmem>>, vector<1x1x96xf32>
    %156 = vector.shape_cast %155 : vector<1x1x96xf32> to vector<1x96xf32>
    %157 = vector.broadcast %156 : vector<1x96xf32> to vector<16x96xf32>
    %158 = arith.addf %154, %157 : vector<16x96xf32>
    %159 = vector.extract_strided_slice %158 {offsets = [0, 0], sizes = [16, 16], strides = [1, 1]} : vector<16x96xf32> to vector<16x16xf32>
    %160 = vector.extract_strided_slice %158 {offsets = [0, 32], sizes = [16, 16], strides = [1, 1]} : vector<16x96xf32> to vector<16x16xf32>
    %161 = vector.extract_strided_slice %158 {offsets = [0, 64], sizes = [16, 16], strides = [1, 1]} : vector<16x96xf32> to vector<16x16xf32>
    %cst_67 = arith.constant dense<0.000000e+00> : vector<16x16xf32>
    %162 = tpu.matmul %159, %160, %cst_67 {dimension_numbers = #tpu.dot_dimension_numbers<[1], [1], [0], [0], [0, 0, 1, 0], [], []>} : vector<16x16xf32>, vector<16x16xf32>, vector<16x16xf32> -> vector<16x16xf32>
    %163 = arith.addf %162, %0 : vector<16x16xf32>
    %cst_68 = arith.constant dense<0xFF800000> : vector<16xf32>
    %164 = vector.multi_reduction <maximumf>, %163, %cst_68 [1] : vector<16x16xf32> to vector<16xf32>
    %165 = vector.shape_cast %164 : vector<16xf32> to vector<16x1xf32>
    %166 = vector.broadcast %165 : vector<16x1xf32> to vector<16x16xf32>
    %167 = arith.subf %163, %166 : vector<16x16xf32>
    %168 = math.exp %167 : vector<16x16xf32>
    %cst_69 = arith.constant dense<0.000000e+00> : vector<16xf32>
    %169 = vector.multi_reduction <add>, %168, %cst_69 [1] : vector<16x16xf32> to vector<16xf32>
    %170 = vector.shape_cast %169 : vector<16xf32> to vector<16x1xf32>
    %171 = tpu.reciprocal %170 {approx = true} : vector<16x1xf32> -> vector<16x1xf32>
    %172 = vector.broadcast %171 : vector<16x1xf32> to vector<16x16xf32>
    %173 = arith.mulf %168, %172 : vector<16x16xf32>
    %cst_70 = arith.constant dense<0.000000e+00> : vector<16x16xf32>
    %174 = tpu.matmul %173, %161, %cst_70 {dimension_numbers = #tpu.dot_dimension_numbers<[1], [0], [0], [1], [0, 0, 1, 1], [], []>} : vector<16x16xf32>, vector<16x16xf32>, vector<16x16xf32> -> vector<16x16xf32>
    %175 = vector.extract_strided_slice %158 {offsets = [0, 16], sizes = [16, 16], strides = [1, 1]} : vector<16x96xf32> to vector<16x16xf32>
    %176 = vector.extract_strided_slice %158 {offsets = [0, 48], sizes = [16, 16], strides = [1, 1]} : vector<16x96xf32> to vector<16x16xf32>
    %177 = vector.extract_strided_slice %158 {offsets = [0, 80], sizes = [16, 16], strides = [1, 1]} : vector<16x96xf32> to vector<16x16xf32>
    %cst_71 = arith.constant dense<0.000000e+00> : vector<16x16xf32>
    %178 = tpu.matmul %175, %176, %cst_71 {dimension_numbers = #tpu.dot_dimension_numbers<[1], [1], [0], [0], [0, 0, 1, 0], [], []>} : vector<16x16xf32>, vector<16x16xf32>, vector<16x16xf32> -> vector<16x16xf32>
    %179 = arith.addf %178, %0 : vector<16x16xf32>
    %cst_72 = arith.constant dense<0xFF800000> : vector<16xf32>
    %180 = vector.multi_reduction <maximumf>, %179, %cst_72 [1] : vector<16x16xf32> to vector<16xf32>
    %181 = vector.shape_cast %180 : vector<16xf32> to vector<16x1xf32>
    %182 = vector.broadcast %181 : vector<16x1xf32> to vector<16x16xf32>
    %183 = arith.subf %179, %182 : vector<16x16xf32>
    %184 = math.exp %183 : vector<16x16xf32>
    %cst_73 = arith.constant dense<0.000000e+00> : vector<16xf32>
    %185 = vector.multi_reduction <add>, %184, %cst_73 [1] : vector<16x16xf32> to vector<16xf32>
    %186 = vector.shape_cast %185 : vector<16xf32> to vector<16x1xf32>
    %187 = tpu.reciprocal %186 {approx = true} : vector<16x1xf32> -> vector<16x1xf32>
    %188 = vector.broadcast %187 : vector<16x1xf32> to vector<16x16xf32>
    %189 = arith.mulf %184, %188 : vector<16x16xf32>
    %cst_74 = arith.constant dense<0.000000e+00> : vector<16x16xf32>
    %190 = tpu.matmul %189, %177, %cst_74 {dimension_numbers = #tpu.dot_dimension_numbers<[1], [0], [0], [1], [0, 0, 1, 1], [], []>} : vector<16x16xf32>, vector<16x16xf32>, vector<16x16xf32> -> vector<16x16xf32>
    %191 = tpu.concatenate %174, %190 in 1 : vector<16x16xf32>, vector<16x16xf32> -> vector<16x32xf32>
    %c1_75 = arith.constant 1 : index
    %c0_76 = arith.constant 0 : index
    %c0_77 = arith.constant 0 : index
    %192 = vector.load %arg5[%c1_75, %c0_76, %c0_77] : memref<2x32x32xf32, #tpu.memory_space<vmem>>, vector<1x32x32xf32>
    %193 = vector.shape_cast %192 : vector<1x32x32xf32> to vector<32x32xf32>
    %cst_78 = arith.constant dense<0.000000e+00> : vector<16x32xf32>
    %194 = tpu.matmul %191, %193, %cst_78 {dimension_numbers = #tpu.dot_dimension_numbers<[1], [0], [0], [1], [0, 0, 1, 1], [], []>} : vector<16x32xf32>, vector<32x32xf32>, vector<16x32xf32> -> vector<16x32xf32>
    %195 = vector.extract_strided_slice %151 {offsets = [0, 0], sizes = [1, 32], strides = [1, 1]} : vector<6x32xf32> to vector<1x32xf32>
    %196 = vector.broadcast %195 : vector<1x32xf32> to vector<16x32xf32>
    %197 = arith.addf %194, %196 : vector<16x32xf32>
    %198 = arith.addf %149, %197 : vector<16x32xf32>
    %199 = vector.extract_strided_slice %151 {offsets = [1, 0], sizes = [1, 32], strides = [1, 1]} : vector<6x32xf32> to vector<1x32xf32>
    %200 = vector.extract_strided_slice %151 {offsets = [2, 0], sizes = [1, 32], strides = [1, 1]} : vector<6x32xf32> to vector<1x32xf32>
    %cst_79 = arith.constant dense<0.000000e+00> : vector<16xf32>
    %201 = vector.multi_reduction <add>, %198, %cst_79 [1] : vector<16x32xf32> to vector<16xf32>
    %202 = vector.shape_cast %201 : vector<16xf32> to vector<16x1xf32>
    %cst_80 = arith.constant 3.200000e+01 : f32
    %203 = vector.broadcast %cst_80 : f32 to vector<16x1xf32>
    %204 = arith.divf %202, %203 : vector<16x1xf32>
    %205 = vector.broadcast %204 : vector<16x1xf32> to vector<16x32xf32>
    %206 = arith.subf %198, %205 : vector<16x32xf32>
    %207 = arith.mulf %206, %206 : vector<16x32xf32>
    %cst_81 = arith.constant dense<0.000000e+00> : vector<16xf32>
    %208 = vector.multi_reduction <add>, %207, %cst_81 [1] : vector<16x32xf32> to vector<16xf32>
    %209 = vector.shape_cast %208 : vector<16xf32> to vector<16x1xf32>
    %cst_82 = arith.constant 3.200000e+01 : f32
    %210 = vector.broadcast %cst_82 : f32 to vector<16x1xf32>
    %211 = arith.divf %209, %210 : vector<16x1xf32>
    %212 = vector.broadcast %204 : vector<16x1xf32> to vector<16x32xf32>
    %213 = arith.subf %198, %212 : vector<16x32xf32>
    %cst_83 = arith.constant 9.99999996E-13 : f32
    %214 = vector.broadcast %cst_83 : f32 to vector<16x1xf32>
    %215 = arith.addf %211, %214 : vector<16x1xf32>
    %216 = math.rsqrt %215 : vector<16x1xf32>
    %217 = vector.broadcast %216 : vector<16x1xf32> to vector<16x32xf32>
    %218 = arith.mulf %213, %217 : vector<16x32xf32>
    %219 = vector.broadcast %199 : vector<1x32xf32> to vector<16x32xf32>
    %220 = arith.mulf %218, %219 : vector<16x32xf32>
    %221 = vector.broadcast %200 : vector<1x32xf32> to vector<16x32xf32>
    %222 = arith.addf %220, %221 : vector<16x32xf32>
    %c1_84 = arith.constant 1 : index
    %c0_85 = arith.constant 0 : index
    %c0_86 = arith.constant 0 : index
    %223 = vector.load %arg6[%c1_84, %c0_85, %c0_86] : memref<2x32x64xf32, #tpu.memory_space<vmem>>, vector<1x32x64xf32>
    %224 = vector.shape_cast %223 : vector<1x32x64xf32> to vector<32x64xf32>
    %cst_87 = arith.constant dense<0.000000e+00> : vector<16x64xf32>
    %225 = tpu.matmul %222, %224, %cst_87 {dimension_numbers = #tpu.dot_dimension_numbers<[1], [0], [0], [1], [0, 0, 1, 1], [], []>} : vector<16x32xf32>, vector<32x64xf32>, vector<16x64xf32> -> vector<16x64xf32>
    %c1_88 = arith.constant 1 : index
    %c0_89 = arith.constant 0 : index
    %c0_90 = arith.constant 0 : index
    %226 = vector.load %arg7[%c1_88, %c0_89, %c0_90] : memref<2x1x64xf32, #tpu.memory_space<vmem>>, vector<1x1x64xf32>
    %227 = vector.shape_cast %226 : vector<1x1x64xf32> to vector<1x64xf32>
    %228 = vector.broadcast %227 : vector<1x64xf32> to vector<16x64xf32>
    %229 = arith.addf %225, %228 : vector<16x64xf32>
    %cst_91 = arith.constant 5.000000e-01 : f32
    %230 = vector.broadcast %cst_91 : f32 to vector<16x64xf32>
    %231 = arith.mulf %230, %229 : vector<16x64xf32>
    %cst_92 = arith.constant 4.471500e-02 : f32
    %232 = vector.broadcast %cst_92 : f32 to vector<16x64xf32>
    %233 = arith.mulf %232, %229 : vector<16x64xf32>
    %234 = arith.mulf %233, %229 : vector<16x64xf32>
    %235 = arith.mulf %234, %229 : vector<16x64xf32>
    %236 = arith.addf %229, %235 : vector<16x64xf32>
    %cst_93 = arith.constant 0.797884583 : f32
    %237 = vector.broadcast %cst_93 : f32 to vector<16x64xf32>
    %238 = arith.mulf %237, %236 : vector<16x64xf32>
    %239 = math.tanh %238 : vector<16x64xf32>
    %cst_94 = arith.constant 1.000000e+00 : f32
    %240 = vector.broadcast %cst_94 : f32 to vector<16x64xf32>
    %241 = arith.addf %240, %239 : vector<16x64xf32>
    %242 = arith.mulf %231, %241 : vector<16x64xf32>
    %c1_95 = arith.constant 1 : index
    %c0_96 = arith.constant 0 : index
    %c0_97 = arith.constant 0 : index
    %243 = vector.load %arg8[%c1_95, %c0_96, %c0_97] : memref<2x64x32xf32, #tpu.memory_space<vmem>>, vector<1x64x32xf32>
    %244 = vector.shape_cast %243 : vector<1x64x32xf32> to vector<64x32xf32>
    %cst_98 = arith.constant dense<0.000000e+00> : vector<16x32xf32>
    %245 = tpu.matmul %242, %244, %cst_98 {dimension_numbers = #tpu.dot_dimension_numbers<[1], [0], [0], [1], [0, 0, 1, 1], [], []>} : vector<16x64xf32>, vector<64x32xf32>, vector<16x32xf32> -> vector<16x32xf32>
    %246 = vector.extract_strided_slice %151 {offsets = [3, 0], sizes = [1, 32], strides = [1, 1]} : vector<6x32xf32> to vector<1x32xf32>
    %247 = vector.broadcast %246 : vector<1x32xf32> to vector<16x32xf32>
    %248 = arith.addf %245, %247 : vector<16x32xf32>
    %249 = arith.addf %222, %248 : vector<16x32xf32>
    %250 = vector.extract_strided_slice %151 {offsets = [4, 0], sizes = [1, 32], strides = [1, 1]} : vector<6x32xf32> to vector<1x32xf32>
    %251 = vector.extract_strided_slice %151 {offsets = [5, 0], sizes = [1, 32], strides = [1, 1]} : vector<6x32xf32> to vector<1x32xf32>
    %cst_99 = arith.constant dense<0.000000e+00> : vector<16xf32>
    %252 = vector.multi_reduction <add>, %249, %cst_99 [1] : vector<16x32xf32> to vector<16xf32>
    %253 = vector.shape_cast %252 : vector<16xf32> to vector<16x1xf32>
    %cst_100 = arith.constant 3.200000e+01 : f32
    %254 = vector.broadcast %cst_100 : f32 to vector<16x1xf32>
    %255 = arith.divf %253, %254 : vector<16x1xf32>
    %256 = vector.broadcast %255 : vector<16x1xf32> to vector<16x32xf32>
    %257 = arith.subf %249, %256 : vector<16x32xf32>
    %258 = arith.mulf %257, %257 : vector<16x32xf32>
    %cst_101 = arith.constant dense<0.000000e+00> : vector<16xf32>
    %259 = vector.multi_reduction <add>, %258, %cst_101 [1] : vector<16x32xf32> to vector<16xf32>
    %260 = vector.shape_cast %259 : vector<16xf32> to vector<16x1xf32>
    %cst_102 = arith.constant 3.200000e+01 : f32
    %261 = vector.broadcast %cst_102 : f32 to vector<16x1xf32>
    %262 = arith.divf %260, %261 : vector<16x1xf32>
    %263 = vector.broadcast %255 : vector<16x1xf32> to vector<16x32xf32>
    %264 = arith.subf %249, %263 : vector<16x32xf32>
    %cst_103 = arith.constant 9.99999996E-13 : f32
    %265 = vector.broadcast %cst_103 : f32 to vector<16x1xf32>
    %266 = arith.addf %262, %265 : vector<16x1xf32>
    %267 = math.rsqrt %266 : vector<16x1xf32>
    %268 = vector.broadcast %267 : vector<16x1xf32> to vector<16x32xf32>
    %269 = arith.mulf %264, %268 : vector<16x32xf32>
    %270 = vector.broadcast %250 : vector<1x32xf32> to vector<16x32xf32>
    %271 = arith.mulf %269, %270 : vector<16x32xf32>
    %272 = vector.broadcast %251 : vector<1x32xf32> to vector<16x32xf32>
    %273 = arith.addf %271, %272 : vector<16x32xf32>
    %274 = vector.extract_strided_slice %273 {offsets = [0, 0], sizes = [1, 32], strides = [1, 1]} : vector<16x32xf32> to vector<1x32xf32>
    %275 = vector.extract_strided_slice %273 {offsets = [8, 0], sizes = [1, 32], strides = [1, 1]} : vector<16x32xf32> to vector<1x32xf32>
    %276 = tpu.concatenate %274, %275 in 0 : vector<1x32xf32>, vector<1x32xf32> -> vector<2x32xf32>
    %c0_104 = arith.constant 0 : index
    %c0_105 = arith.constant 0 : index
    %277 = vector.load %arg10[%c0_104, %c0_105] : memref<2x32xf32, #tpu.memory_space<vmem>>, vector<2x32xf32>
    tpu.vector_store %arg10[%c0_104, %c0_105], %276 {strides = array<i32>} : memref<2x32xf32, #tpu.memory_space<vmem>>, vector<2x32xf32>,
    return
  }
}

</mosaic_0001>

<bundles_post_ra>
// kernel: tpu_custom_call.1
= control target key start
LH: loop header
LB: loop body
LE: loop exit
PB: predicated region body
PF: predicated region fallthrough
CT: control target
= control target key end

     0   :  { %15 = vsyncpa [#allocation3], 0  ;;  %s2905_s0 = inlined_call_operand.vmem [shape: f32[16,32], index: 0, kind: input, shape index: {}]   ;;  %s2906_s1 = inlined_call_operand.hbm [shape: f32[16,16], index: 1, kind: input, shape index: {}]   ;;  %s2907_s2 = inlined_call_operand.vmem [shape: f32[2,32], index: 2, kind: input, shape index: {}]   ;;  %s2908_s3 = inlined_call_operand.vmem [shape: f32[2,32,96], index: 3, kind: input, shape index: {}]   ;;  %s2909_s4 = inlined_call_operand.vmem [shape: f32[2,1,96], index: 4, kind: input, shape index: {}]   ;;  %s2910_s5 = inlined_call_operand.vmem [shape: f32[2,32,32], index: 5, kind: input, shape index: {}]   ;;  %s2911_s6 = inlined_call_operand.vmem [shape: f32[2,32,64], index: 6, kind: input, shape index: {}]   ;;  %s2912_s7 = inlined_call_operand.vmem [shape: f32[2,1,64], index: 7, kind: input, shape index: {}]   ;;  %s2913_s8 = inlined_call_operand.vmem [shape: f32[2,64,32], index: 8, kind: input, shape index: {}]   ;;  %s2914_s9 = inlined_call_operand.vmem [shape: f32[2,6,32], index: 9, kind: input, shape index: {}]   ;;  %s2915_s10 = inlined_call_operand.hbm [shape: f32[2,32], index: 10, kind: output, shape index: {}]  }
   0x1   :  { %16 = vsyncpa [#allocation4], 0  ;;  %s2468_s13 = smov [#allocation2]   ;;  %s2420_s17 = scalar_lea.hbm %s2906_s1, 256 }
   0x2   :  { %s24_s14 = sshll.u32 %s2468_s13, 4  ;;  %p2421_p0 = scmp.ne.s32.totalorder %s2906_s1, %s2420_s17  ;;  %s25_s14 = int_to_ptr.vmem [resolvable:$true] %s24_s14 }
   0x3   :  { %p2424_p1 = scmp.lt.u32.totalorder %s2420_s17, %s2906_s1 }
   0x5   :  { %p2426_p2 = pnand %p2424_p1, %p2421_p0 }
   0x7   :  { %2429 = shalt.err (!%p2426_p2)
}
   0x8   :  { %s2430_s22 = scalar_lea.vmem %s25_s14, 256  ;;  %p2435_p4 = scmp.lt.s32.totalorder %s25_s14, %s25_s14 }
   0x9   :  { %p2431_p3 = scmp.ne.s32.totalorder %s25_s14, %s2430_s22  ;;  %p2436_p5 = scmp.lt.s32.totalorder %s2430_s22, %s2430_s22 }
   0xb   :  { %p2437_p6 = por %p2436_p5, %p2435_p4 }
   0xd   :  { %p2438_p7 = pnand %p2437_p6, %p2431_p3 }
   0xf   :  { %2441 = shalt.err (!%p2438_p7)
}
  0x10   :  { %s2469_s23 = smov 128   ;;  %s2470_s24 = smov 8  }
  0x11   :  { %30 = dma.hbm_to_vmem [thread:$0]  %s2906_s1, 256, %s25_s14, [#allocation3], %s2469_s23, %s2469_s23, %s2470_s24  }
  0x12   :  { %2464 = dma.done.wait [#allocation3], 256  }
  0x13   :  { %2465 = vsyncadd [#allocation3], 4294967040  ;;  %vm56_vm0 = vcmask 261120   ;;  %v52_v0 = vld [vmem:[%s2905_s0] sm:$0xff]  ;;  %v53_v1 = vld [vmem:[%s2905_s0 + $0x8] sm:$0xff]  ;;  %vm195_vm1 = vcmask 130048  }
  0x14   :  { %v57_v2 = vsel %vm56_vm0, %v52_v0, 0.0  ;;  %v60_v3 = vsel %vm56_vm0, %v53_v1, 0.0  ;;  %v97_v14 = vld [vmem:[%s2908_s3] sm:$0xff]  ;;  %v98_v15 = vld [vmem:[%s2908_s3 + $0x8] sm:$0xff]  ;;  %v99_v16 = vld [vmem:[%s2908_s3 + $0x10] sm:$0xff]  ;;  %s2472_s23 = smov 96  }
  0x15   :  { %58 = vadd.xlane.f32.xlu0 %v57_v2  ;;  %v2190_v17 = vpack.c.bf16 %v98_v15, %v97_v14  ;;  %v100_v18 = vld [vmem:[%s2908_s3 + $0x18] sm:$0xff]  ;;  %v1873_v27 = vld [vmem:[%s2907_s2] ss:$0 sm:$0xff]  ;;  %v1874_v29 = vld [vmem:[%s2907_s2 + $0x1] ss:$0 sm:$0xff]  ;;  %s2471_s2 = smov 80  }
  0x16   :  { %v2194_v19 = vpack.c.bf16 %v100_v18, %v99_v16  ;;  %v1875_v36 = vld [vmem:[%s2909_s4] ss:$0 sm:$0xff]  ;;  %s2473_s24 = smov 112   ;;  %vm2595_vm2 = vmpackc.low %vm195_vm1, %vm195_vm1  ;;  %v2610_v53 = vld [vmem:[#allocation2 + $0x8] sm:$0xff]  ;;  %s2474_s25 = smov 48   ;;  %vm849_vm3 = vcmask 523264  }
  0x17   :  { %2191 = vmatprep.subr.bf16.mxu1 %v2190_v17  ;;  %v2612_v54 = vld [vmem:[#allocation2] sm:$0xff]  ;;  %s2475_s26 = smov 64   ;;  %s2476_s13 = smov 16   ;;  %vm1854_vm4 = vcmask 1040384   ;;  %vm1856_vm5 = vcmask 254976  }
  0x18   :  { %2193 = vmatpush3.bf16.msra.mxu1 %v2190_v17 }
  0x19   :  { %61 = vadd.xlane.f32.xlu0 %v60_v3  ;;  %2195 = vmatprep.subr.bf16.mxu1 %v2194_v19 }
  0x1c   :  { %2197 = vmatpush3.bf16.msra.mxu1 %v2194_v19 }
  0xa2   :  { %v59_v4 = vpop.xlane.xlu0 %58 }
  0xa3   :  { %v64_v5 = vmul.f32 0.03125, %v59_v4 }
  0xa5   :  { %v66_v6 = vsub.f32 %v52_v0, %v64_v5 }
  0xa6   :  { %v62_v7 = vpop.xlane.xlu0 %61 }
  0xa7   :  { %v65_v8 = vmul.f32 0.03125, %v62_v7  ;;  %v68_v9 = vmul.f32 %v66_v6, %v66_v6 }
  0xa9   :  { %v67_v10 = vsub.f32 %v53_v1, %v65_v8  ;;  %v70_v11 = vsel %vm56_vm0, %v68_v9, 0.0 }
  0xaa   :  { %71 = vadd.xlane.f32.xlu1 %v70_v11 }
  0xab   :  { %v69_v12 = vmul.f32 %v67_v10, %v67_v10 }
  0xad   :  { %v73_v13 = vsel %vm56_vm0, %v69_v12, 0.0 }
  0xae   :  { %74 = vadd.xlane.f32.xlu1 %v73_v13 }
 0x137   :  { %v72_v20 = vpop.xlane.xlu1 %71 }
 0x138   :  { %v76_v21 = vmul.f32 0.03125, %v72_v20 }
 0x13a   :  { %v78_v22 = vadd.f32 1e-12, %v76_v21 }
 0x13b   :  { %v75_v23 = vpop.xlane.xlu1 %74 }
 0x13c   :  { %2360 = vrsqrt.f32 %v78_v22  ;;  %v77_v24 = vmul.f32 0.03125, %v75_v23 }
 0x13e   :  { %v79_v25 = vadd.f32 1e-12, %v77_v24 }
 0x140   :  { %2362 = vrsqrt.f32 %v79_v25 }
 0x146   :  { %v2361_v26 = vpop.eup %2360 }
 0x147   :  { %v82_v28 = vmul.f32 %v2361_v26, %v66_v6 }
 0x149   :  { %v88_v30 = vmul.f32 %v1873_v27, %v82_v28 }
 0x14a   :  { %v2363_v31 = vpop.eup %2362 }
 0x14b   :  { %v83_v32 = vmul.f32 %v2363_v31, %v67_v10  ;;  %v2573_v33 = vadd.f32 %v1874_v29, %v88_v30 }
 0x14d   :  { %v89_v34 = vmul.f32 %v1873_v27, %v83_v32  ;;  %2038 = vmatprep.mubr.msk.f32.mxu1 %vm56_vm0, %v2573_v33 }
 0x14f   :  { %v2577_v35 = vadd.f32 %v1874_v29, %v89_v34 }
 0x151   :  { %2039 = vmatmul.mubr.msk.f32.vlgmr.msra.gmra.mrb[0].mxu1 %vm56_vm0, %v2577_v35 }
 0x224   :  { %v2040_v37 = vpop.f32.mrb[0].mxu1 }
 0x225   :  { %v186_v38 = vadd.f32 %v2040_v37, %v1875_v36  ;;  %v180_v39 = vpop.f32.mrb[1].mxu1 }
 0x226   :  { %v181_v40 = vadd.f32 %v1875_v36, %v180_v39 }
 0x228   :  { %2045 = vmatprep.mubr.msk.f32.mxu1 %vm195_vm1, %v181_v40  ;;  %v2585_v41 = vpack.i.bf16 %v186_v38, %v181_v40 }
 0x22a   :  { %2326 = vrot.lane.b32.xlu1 %v2585_v41, %s2471_s2  ;;  %2321 = vrot.lane.b32.xlu0 %v2585_v41, %s2472_s23 }
 0x22e   :  { %388 = vrot.lane.b32.xlu1 %v181_v40, %s2473_s24 }
 0x232   :  { %390 = vrot.lane.b32.xlu1 %v186_v38, %s2473_s24 }
 0x29c   :  { %v2327_v42 = vpop.permute.xlu1 %2326  ;;  %v2322_v43 = vpop.permute.xlu0 %2321 }
 0x29d   :  { %v2329_v44 = vunpack.i.h.bf16 %v2327_v42  ;;  %v2328_v45 = vunpack.i.l.bf16 %v2327_v42  ;;  %v2324_v46 = vunpack.i.h.bf16 %v2322_v43  ;;  %v2323_v47 = vunpack.i.l.bf16 %v2322_v43 }
 0x29f   :  { %v2198_v49 = vpack.c.bf16 %v2324_v46, %v2323_v47  ;;  %v2208_v50 = vpack.c.bf16 %v2329_v44, %v2328_v45  ;;  %v598_v45 = vld [vmem:[%s2910_s5] sm:$0xff]  ;;  %v599_v46 = vld [vmem:[%s2910_s5 + $0x8] sm:$0xff] }
 0x2a0   :  { %v389_v51 = vpop.permute.xlu1 %388  ;;  %v2218_v47 = vpack.c.bf16 %v599_v46, %v598_v45  ;;  %v837_v45 = vld [vmem:[%s2913_s8] sm:$0xff]  ;;  %v838_v46 = vld [vmem:[%s2913_s8 + $0x8] sm:$0xff] }
 0x2a1   :  { %2200 = vmatprep.subr.msk.bf16.mxu1 %vm2595_vm2, %v2198_v49 }
 0x2a2   :  { %2203 = vmatpush3.bf16.xpose.msk.msra.mxu1 %vm2595_vm2, %v2198_v49  ;;  %v600_v49 = vld [vmem:[%s2910_s5 + $0x10] sm:$0xff] }
 0x2a3   :  { %2210 = vmatprep.subr.msk.bf16.mxu1 %vm2595_vm2, %v2208_v50 }
 0x2a4   :  { %v391_v52 = vpop.permute.xlu1 %390 }
 0x2a9   :  { %2046 = vmatmul.mubr.msk.f32.vlgmr.msra.gmra.mrb[2].mxu1 %vm195_vm1, %v186_v38 }
 0x2aa   :  { %2213 = vmatpush3.bf16.xpose.msk.msra.mxu1 %vm2595_vm2, %v2208_v50  ;;  %2059 = vmatprep.mubr.msk.f32.mxu1 %vm195_vm1, %v389_v51  ;;  %v601_v50 = vld [vmem:[%s2910_s5 + $0x18] sm:$0xff] }
 0x2ab   :  { %v2222_v51 = vpack.c.bf16 %v601_v50, %v600_v49  ;;  %v839_v49 = vld [vmem:[%s2913_s8 + $0x10] sm:$0xff]  ;;  %v840_v50 = vld [vmem:[%s2913_s8 + $0x18] sm:$0xff] }
 0x2b1   :  { %2060 = vmatmul.mubr.msk.f32.vlgmr.msra.gmra.mrb[4].mxu1 %vm195_vm1, %v391_v52 }
 0x37c   :  { %v2047_v55 = vpop.f32.mrb[2].mxu1 }
 0x37d   :  { %v276_v56 = vadd.f32 %v2047_v55, %v2610_v53  ;;  %v270_v57 = vpop.f32.mrb[3].mxu1 }
 0x37e   :  { %v271_v58 = vadd.f32 %v270_v57, %v2612_v54 }
 0x37f   :  { %v282_v59 = vsel %vm195_vm1, %v276_v56, -inf }
 0x380   :  { %283 = vmax.xlane.f32.xlu1 %v282_v59  ;;  %v279_v60 = vsel %vm195_vm1, %v271_v58, -inf }
 0x381   :  { %280 = vmax.xlane.f32.xlu0 %v279_v60 }
 0x384   :  { %v2061_v61 = vpop.f32.mrb[4].mxu1 }
 0x385   :  { %v470_v62 = vpop.f32.mrb[5].mxu1  ;;  %v476_v0 = vadd.f32 %v2061_v61, %v2610_v53 }
 0x386   :  { %v471_v63 = vadd.f32 %v470_v62, %v2612_v54  ;;  %v602_v62 = vlaneseq }
 0x387   :  { %v482_v2 = vsel %vm195_vm1, %v476_v0, -inf }
 0x388   :  { %v479_v1 = vsel %vm195_vm1, %v471_v63, -inf }
 0x389   :  { %480 = vmax.xlane.f32.xlu0 %v479_v1  ;;  %v2658_v1 = vld [vmem:[%s2914_s9] sm:$0x3f] }
 0x38d   :  { %483 = vmax.xlane.f32.xlu0 %v482_v2 }
 0x40d   :  { %v284_v3 = vpop.xlane.xlu1 %283 }
 0x40e   :  { %v286_v4 = vsub.f32 %v276_v56, %v284_v3  ;;  %v281_v5 = vpop.xlane.xlu0 %280 }
 0x40f   :  { %v285_v6 = vsub.f32 %v271_v58, %v281_v5 }
 0x410   :  { %v289_v7 = vmul.f32 1.442695, %v286_v4 }
 0x411   :  { %v287_v8 = vmul.f32 1.442695, %v285_v6 }
 0x412   :  { %2364 = vpow2.f32 %v289_v7 }
 0x413   :  { %2366 = vpow2.f32 %v287_v8 }
 0x416   :  { %v481_v9 = vpop.xlane.xlu0 %480 }
 0x417   :  { %v485_v10 = vsub.f32 %v471_v63, %v481_v9  ;;  %v2652_v63 = vshrl.u32 %v602_v62, 7 }
 0x419   :  { %v487_v11 = vmul.f32 1.442695, %v485_v10 }
 0x41a   :  { %v484_v12 = vpop.xlane.xlu0 %483 }
 0x41b   :  { %2368 = vpow2.f32 %v487_v11  ;;  %v486_v13 = vsub.f32 %v476_v0, %v484_v12  ;;  %v604_v0 = vsub.s32 0, %v2652_v63 }
 0x41c   :  { %v2365_v14 = vpop.eup %2364 }
 0x41d   :  { %v2367_v15 = vpop.eup %2366  ;;  %v489_v16 = vmul.f32 1.442695, %v486_v13  ;;  %v294_v17 = vsel %vm195_vm1, %v2365_v14, 0.0  ;;  %v605_v2 = vrot.slane %v2658_v1, %v604_v0 }
 0x41e   :  { %295 = vadd.xlane.f32.xlu1 %v294_v17  ;;  %v291_v18 = vsel %vm195_vm1, %v2367_v15, 0.0 }
 0x41f   :  { %2370 = vpow2.f32 %v489_v16  ;;  %292 = vadd.xlane.f32.xlu0 %v291_v18 }
 0x425   :  { %v2369_v19 = vpop.eup %2368 }
 0x426   :  { %v491_v20 = vsel %vm195_vm1, %v2369_v19, 0.0 }
 0x427   :  { %492 = vadd.xlane.f32.xlu0 %v491_v20  ;;  %v728_v20 = vld [vmem:[%s2911_s6 + $0x8] sm:$0xff] }
 0x429   :  { %v2371_v21 = vpop.eup %2370 }
 0x42a   :  { %v494_v22 = vsel %vm195_vm1, %v2371_v21, 0.0 }
 0x42b   :  { %495 = vadd.xlane.f32.xlu1 %v494_v22  ;;  %v729_v22 = vld [vmem:[%s2911_s6 + $0x10] sm:$0xff] }
 0x43c   :  { %2336 = vrot.lane.b32.xlu1 %v2585_v41, %s2474_s25 }
 0x43d   :  { %2331 = vrot.lane.b32.xlu0 %v2585_v41, %s2475_s26 }
 0x4ab   :  { %v296_v24 = vpop.xlane.xlu1 %295 }
 0x4ac   :  { %v293_v23 = vpop.xlane.xlu0 %292 }
 0x4ad   :  { %2372 = vrcp.f32 %v293_v23  ;;  %v730_v23 = vld [vmem:[%s2911_s6 + $0x18] sm:$0xff] }
 0x4ae   :  { %2374 = vrcp.f32 %v296_v24  ;;  %v2230_v24 = vpack.c.bf16 %v730_v23, %v729_v22 }
 0x4b4   :  { %v493_v25 = vpop.xlane.xlu0 %492 }
 0x4b5   :  { %2376 = vrcp.f32 %v493_v25 }
 0x4b7   :  { %v2373_v26 = vpop.eup %2372 }
 0x4b8   :  { %v2332_v27 = vpop.permute.xlu0 %2331  ;;  %v496_v28 = vpop.xlane.xlu1 %495  ;;  %v299_v29 = vmul.f32 %v2373_v26, %v2367_v15 }
 0x4b9   :  { %v2334_v30 = vunpack.i.h.bf16 %v2332_v27  ;;  %v2333_v31 = vunpack.i.l.bf16 %v2332_v27  ;;  %2378 = vrcp.f32 %v496_v28  ;;  %v2375_v34 = vpop.eup %2374 }
 0x4ba   :  { %2052 = vmatprep.mubr.msk.f32.mxu0 %vm195_vm1, %v299_v29  ;;  %v300_v41 = vmul.f32 %v2375_v34, %v2365_v14 }
 0x4bb   :  { %v2204_v32 = vpack.c.bf16 %v2334_v30, %v2333_v31  ;;  %v717_v31 = vsub.s32 1, %v2652_v63 }
 0x4bc   :  { %v2337_v36 = vpop.permute.xlu1 %2336 }
 0x4bd   :  { %v2339_v37 = vunpack.i.h.bf16 %v2337_v36  ;;  %v2338_v38 = vunpack.i.l.bf16 %v2337_v36  ;;  %2205 = vmatprep.subr.bf16.mxu0 %v2204_v32  ;;  %v718_v34 = vrot.slane %v2658_v1, %v717_v31 }
 0x4be   :  { %2207 = vmatpush3.bf16.msra.mxu0 %v2204_v32  ;;  %v723_v32 = vsub.s32 2, %v2652_v63 }
 0x4bf   :  { %v2377_v39 = vpop.eup %2376  ;;  %v2214_v40 = vpack.c.bf16 %v2339_v37, %v2338_v38 }
 0x4c0   :  { %v499_v42 = vmul.f32 %v2377_v39, %v2369_v19  ;;  %v724_v38 = vrot.slane %v2658_v1, %v723_v32 }
 0x4c1   :  { %2053 = vmatmul.mubr.msk.f32.vlgmr.msra.gmra.mrb[0].mxu0 %vm195_vm1, %v300_v41  ;;  %2215 = vmatprep.subr.bf16.mxu0 %v2214_v40 }
 0x4c2   :  { %2217 = vmatpush3.bf16.msra.mxu0 %v2214_v40  ;;  %2066 = vmatprep.mubr.msk.f32.mxu0 %vm195_vm1, %v499_v42 }
 0x4c3   :  { %v2379_v43 = vpop.eup %2378  ;;  %2219 = vmatprep.subr.bf16.mxu0 %v2218_v47 }
 0x4c4   :  { %v500_v44 = vmul.f32 %v2379_v43, %v2371_v21 }
 0x4c6   :  { %2067 = vmatmul.mubr.msk.f32.vlgmr.msra.gmra.mrb[2].mxu0 %vm195_vm1, %v500_v44 }
 0x4c7   :  { %2221 = vmatpush3.bf16.msra.mxu0 %v2218_v47  ;;  %v2234_v47 = vpack.c.bf16 %v838_v46, %v837_v45  ;;  %v1899_v45 = vld [vmem:[%s2908_s3 + $0x28] sm:$0xff] }
 0x4c8   :  { %2223 = vmatprep.subr.bf16.mxu0 %v2222_v51 }
 0x4cb   :  { %2225 = vmatpush3.bf16.msra.mxu0 %v2222_v51  ;;  %v841_v51 = vld [vmem:[%s2913_s8 + $0x20] sm:$0xff] }
 0x4cc   :  { %2235 = vmatprep.subr.bf16.mxu0 %v2234_v47 }
 0x594   :  { %v2054_v52 = vpop.f32.mrb[0].mxu0 }
 0x595   :  { %v379_v55 = vpop.f32.mrb[1].mxu0 }
 0x599   :  { %v2068_v56 = vpop.f32.mrb[2].mxu0 }
 0x59a   :  { %v579_v57 = vpop.f32.mrb[3].mxu0 }
 0x59b   :  { %590 = vrot.lane.b32.xlu1 %v579_v57, %s2476_s13  ;;  %v843_v57 = vld [vmem:[%s2913_s8 + $0x30] sm:$0xff] }
 0x59f   :  { %592 = vrot.lane.b32.xlu1 %v2068_v56, %s2476_s13 }
 0x60d   :  { %v591_v58 = vpop.permute.xlu1 %590 }
 0x60e   :  { %v596_v59 = vsel %vm195_vm1, %v379_v55, %v591_v58  ;;  %v842_v55 = vld [vmem:[%s2913_s8 + $0x28] sm:$0xff]  ;;  %v844_v58 = vld [vmem:[%s2913_s8 + $0x38] sm:$0xff] }
 0x60f   :  { %2077 = vmatprep.mubr.msk.f32.mxu0 %vm56_vm0, %v596_v59  ;;  %v2242_v56 = vpack.c.bf16 %v842_v55, %v841_v51  ;;  %v2246_v59 = vpack.c.bf16 %v844_v58, %v843_v57 }
 0x611   :  { %v593_v60 = vpop.permute.xlu1 %592 }
 0x612   :  { %v597_v61 = vsel %vm195_vm1, %v2054_v52, %v593_v60  ;;  %v2238_v52 = vpack.c.bf16 %v840_v50, %v839_v49  ;;  %v1892_v60 = vld [vmem:[%s2912_s7] ss:$0 sm:$0xff]  ;;  %v1901_v49 = vld [vmem:[%s2908_s3 + $0x38] sm:$0xff] }
 0x613   :  { %2078 = vmatmul.mubr.msk.f32.vlgmr.msra.gmra.mrb[4].mxu0 %vm56_vm0, %v597_v61 }
 0x614   :  { %2237 = vmatpush3.bf16.msra.mxu0 %v2234_v47  ;;  %v1900_v47 = vld [vmem:[%s2908_s3 + $0x30] sm:$0xff] }
 0x615   :  { %2239 = vmatprep.subr.bf16.mxu0 %v2238_v52  ;;  %v2254_v50 = vpack.c.bf16 %v1901_v49, %v1900_v47 }
 0x618   :  { %2241 = vmatpush3.bf16.msra.mxu0 %v2238_v52 }
 0x619   :  { %2243 = vmatprep.subr.bf16.mxu0 %v2242_v56 }
 0x61c   :  { %2245 = vmatpush3.bf16.msra.mxu0 %v2242_v56 }
 0x61d   :  { %2247 = vmatprep.subr.bf16.mxu0 %v2246_v59 }
 0x620   :  { %2249 = vmatpush3.bf16.msra.mxu0 %v2246_v59  ;;  %v961_v59 = vsub.s32 4, %v2652_v63 }
 0x6e6   :  { %v2079_v3 = vpop.f32.mrb[4].mxu0 }
 0x6e7   :  { %v684_v4 = vadd.f32 %v2079_v3, %v605_v2  ;;  %v678_v5 = vpop.f32.mrb[5].mxu0 }
 0x6e8   :  { %v679_v6 = vadd.f32 %v678_v5, %v605_v2 }
 0x6e9   :  { %v688_v7 = vadd.f32 %v684_v4, %v2577_v35 }
 0x6ea   :  { %v687_v8 = vadd.f32 %v679_v6, %v2573_v33  ;;  %v727_v33 = vld [vmem:[%s2911_s6] sm:$0xff] }
 0x6eb   :  { %v692_v9 = vsel %vm56_vm0, %v688_v7, 0.0  ;;  %v2226_v21 = vpack.c.bf16 %v728_v20, %v727_v33  ;;  %v847_v20 = vsub.s32 3, %v2652_v63 }
 0x6ec   :  { %693 = vadd.xlane.f32.xlu1 %v692_v9  ;;  %v689_v10 = vsel %vm56_vm0, %v687_v8, 0.0 }
 0x6ed   :  { %690 = vadd.xlane.f32.xlu0 %v689_v10  ;;  %2227 = vmatprep.subr.bf16.mxu1 %v2226_v21 }
 0x6ee   :  { %2229 = vmatpush3.bf16.msra.mxu1 %v2226_v21  ;;  %v848_v21 = vrot.slane %v2658_v1, %v847_v20 }
 0x6ef   :  { %2231 = vmatprep.subr.bf16.mxu1 %v2230_v24 }
 0x6f2   :  { %2233 = vmatpush3.bf16.msra.mxu1 %v2230_v24 }
 0x779   :  { %v694_v11 = vpop.xlane.xlu1 %693 }
 0x77a   :  { %v696_v12 = vmul.f32 0.03125, %v694_v11  ;;  %v691_v13 = vpop.xlane.xlu0 %690 }
 0x77b   :  { %v695_v14 = vmul.f32 0.03125, %v691_v13 }
 0x77c   :  { %v698_v15 = vsub.f32 %v688_v7, %v696_v12 }
 0x77d   :  { %v697_v16 = vsub.f32 %v687_v8, %v695_v14 }
 0x77e   :  { %v700_v19 = vmul.f32 %v698_v15, %v698_v15 }
 0x77f   :  { %v699_v17 = vmul.f32 %v697_v16, %v697_v16 }
 0x780   :  { %v704_v35 = vsel %vm56_vm0, %v700_v19, 0.0 }
 0x781   :  { %v701_v18 = vsel %vm56_vm0, %v699_v17, 0.0 }
 0x782   :  { %702 = vadd.xlane.f32.xlu0 %v701_v18 }
 0x786   :  { %705 = vadd.xlane.f32.xlu0 %v704_v35 }
 0x80f   :  { %v703_v25 = vpop.xlane.xlu0 %702 }
 0x810   :  { %v707_v26 = vmul.f32 0.03125, %v703_v25 }
 0x812   :  { %v709_v27 = vadd.f32 1e-12, %v707_v26 }
 0x813   :  { %v706_v28 = vpop.xlane.xlu0 %705 }
 0x814   :  { %2380 = vrsqrt.f32 %v709_v27  ;;  %v708_v29 = vmul.f32 0.03125, %v706_v28 }
 0x816   :  { %v710_v30 = vadd.f32 1e-12, %v708_v29 }
 0x818   :  { %2382 = vrsqrt.f32 %v710_v30 }
 0x81e   :  { %v2381_v36 = vpop.eup %2380 }
 0x81f   :  { %v713_v37 = vmul.f32 %v2381_v36, %v697_v16 }
 0x821   :  { %v719_v39 = vmul.f32 %v718_v34, %v713_v37 }
 0x822   :  { %v2383_v40 = vpop.eup %2382 }
 0x823   :  { %v714_v41 = vmul.f32 %v2383_v40, %v698_v15  ;;  %v725_v42 = vadd.f32 %v724_v38, %v719_v39 }
 0x825   :  { %v720_v43 = vmul.f32 %v718_v34, %v714_v41  ;;  %2088 = vmatprep.mubr.msk.f32.mxu1 %vm56_vm0, %v725_v42 }
 0x827   :  { %v726_v44 = vadd.f32 %v724_v38, %v720_v43 }
 0x829   :  { %2089 = vmatmul.mubr.msk.f32.vlgmr.msra.gmra.mrb[6].mxu1 %vm56_vm0, %v726_v44 }
 0x8fc   :  { %v2090_v61 = vpop.f32.mrb[6].mxu1 }
 0x8fd   :  { %v816_v62 = vadd.f32 %v2090_v61, %v1892_v60  ;;  %v810_v2 = vpop.f32.mrb[7].mxu1  ;;  %v962_v61 = vrot.slane %v2658_v1, %v961_v59 }
 0x8fe   :  { %v811_v3 = vadd.f32 %v1892_v60, %v810_v2  ;;  %v967_v60 = vsub.s32 5, %v2652_v63 }
 0x8ff   :  { %v822_v4 = vmul.f32 0.044715, %v816_v62  ;;  %v820_v19 = vmul.f32 0.5, %v816_v62 }
 0x900   :  { %v821_v5 = vmul.f32 0.044715, %v811_v3  ;;  %v819_v17 = vmul.f32 0.5, %v811_v3 }
 0x901   :  { %v824_v6 = vmul.f32 %v822_v4, %v816_v62 }
 0x902   :  { %v823_v7 = vmul.f32 %v821_v5, %v811_v3  ;;  %v968_v5 = vrot.slane %v2658_v1, %v967_v60 }
 0x903   :  { %v826_v8 = vmul.f32 %v824_v6, %v816_v62 }
 0x904   :  { %v825_v9 = vmul.f32 %v823_v7, %v811_v3 }
 0x905   :  { %v828_v10 = vadd.f32 %v826_v8, %v816_v62 }
 0x906   :  { %v827_v11 = vadd.f32 %v825_v9, %v811_v3 }
 0x907   :  { %v830_v12 = vmul.f32 0.7978846, %v828_v10  ;;  %v1903_v10 = vld [vmem:[%s2909_s4 + $0x1] ss:$0 sm:$0xff] }
 0x908   :  { %v829_v13 = vmul.f32 0.7978846, %v827_v11 }
 0x909   :  { %2384 = vtanh.f32 %v830_v12 }
 0x90a   :  { %2386 = vtanh.f32 %v829_v13 }
 0x913   :  { %v2385_v14 = vpop.eup %2384 }
 0x914   :  { %v2387_v15 = vpop.eup %2386  ;;  %v834_v16 = vadd.f32 1.0, %v2385_v14 }
 0x915   :  { %v833_v18 = vadd.f32 1.0, %v2387_v15 }
 0x916   :  { %v836_v33 = vmul.f32 %v834_v16, %v820_v19 }
 0x917   :  { %v835_v35 = vmul.f32 %v833_v18, %v819_v17 }
 0x919   :  { %2107 = vmatprep.mubr.msk.f32.mxu0 %vm849_vm3, %v835_v35 }
 0x91a   :  { %2108 = vmatmul.mubr.msk.f32.vlgmr.msra.gmra.mrb[6].mxu0 %vm849_vm3, %v836_v33 }
 0x9ed   :  { %v2109_v22 = vpop.f32.mrb[6].mxu0 }
 0x9ee   :  { %v928_v23 = vadd.f32 %v2109_v22, %v848_v21  ;;  %v922_v24 = vpop.f32.mrb[7].mxu0 }
 0x9ef   :  { %v923_v25 = vadd.f32 %v922_v24, %v848_v21 }
 0x9f0   :  { %v932_v26 = vadd.f32 %v928_v23, %v726_v44 }
 0x9f1   :  { %v931_v27 = vadd.f32 %v923_v25, %v725_v42  ;;  %v1898_v42 = vld [vmem:[%s2908_s3 + $0x20] sm:$0xff] }
 0x9f2   :  { %v936_v28 = vsel %vm56_vm0, %v932_v26, 0.0  ;;  %v2250_v46 = vpack.c.bf16 %v1899_v45, %v1898_v42 }
 0x9f3   :  { %937 = vadd.xlane.f32.xlu1 %v936_v28  ;;  %v933_v29 = vsel %vm56_vm0, %v931_v27, 0.0 }
 0x9f4   :  { %934 = vadd.xlane.f32.xlu0 %v933_v29  ;;  %2251 = vmatprep.subr.bf16.mxu1 %v2250_v46 }
 0x9f5   :  { %2253 = vmatpush3.bf16.msra.mxu1 %v2250_v46 }
 0x9f6   :  { %2255 = vmatprep.subr.bf16.mxu1 %v2254_v50 }
 0x9f9   :  { %2257 = vmatpush3.bf16.msra.mxu1 %v2254_v50 }
 0xa80   :  { %v938_v30 = vpop.xlane.xlu1 %937 }
 0xa81   :  { %v940_v34 = vmul.f32 0.03125, %v938_v30  ;;  %v935_v36 = vpop.xlane.xlu0 %934 }
 0xa82   :  { %v939_v37 = vmul.f32 0.03125, %v935_v36 }
 0xa83   :  { %v942_v38 = vsub.f32 %v932_v26, %v940_v34 }
 0xa84   :  { %v941_v39 = vsub.f32 %v931_v27, %v939_v37 }
 0xa85   :  { %v944_v40 = vmul.f32 %v942_v38, %v942_v38 }
 0xa86   :  { %v943_v41 = vmul.f32 %v941_v39, %v941_v39 }
 0xa87   :  { %v948_v43 = vsel %vm56_vm0, %v944_v40, 0.0 }
 0xa88   :  { %949 = vadd.xlane.f32.xlu1 %v948_v43  ;;  %v945_v44 = vsel %vm56_vm0, %v943_v41, 0.0 }
 0xa89   :  { %946 = vadd.xlane.f32.xlu0 %v945_v44 }
 0xb15   :  { %v950_v51 = vpop.xlane.xlu1 %949 }
 0xb16   :  { %v952_v52 = vmul.f32 0.03125, %v950_v51  ;;  %v947_v55 = vpop.xlane.xlu0 %946 }
 0xb17   :  { %v951_v56 = vmul.f32 0.03125, %v947_v55 }
 0xb18   :  { %v954_v57 = vadd.f32 1e-12, %v952_v52 }
 0xb19   :  { %v953_v58 = vadd.f32 1e-12, %v951_v56 }
 0xb1a   :  { %2388 = vrsqrt.f32 %v954_v57 }
 0xb1b   :  { %2390 = vrsqrt.f32 %v953_v58 }
 0xb24   :  { %v2389_v62 = vpop.eup %2388 }
 0xb25   :  { %v2391_v2 = vpop.eup %2390  ;;  %v958_v3 = vmul.f32 %v2389_v62, %v942_v38 }
 0xb26   :  { %v957_v4 = vmul.f32 %v2391_v2, %v941_v39 }
 0xb27   :  { %v964_v6 = vmul.f32 %v962_v61, %v958_v3 }
 0xb28   :  { %v963_v7 = vmul.f32 %v962_v61, %v957_v4 }
 0xb29   :  { %v2750_v9 = vadd.f32 %v968_v5, %v964_v6 }
 0xb2a   :  { %v2748_v8 = vadd.f32 %v968_v5, %v963_v7 }
 0xb2c   :  { %2118 = vmatprep.mubr.msk.f32.mxu1 %vm56_vm0, %v2748_v8 }
 0xb2d   :  { %2119 = vmatmul.mubr.msk.f32.vlgmr.msra.gmra.mrb[8].mxu1 %vm56_vm0, %v2750_v9 }
 0xc00   :  { %v2120_v11 = vpop.f32.mrb[8].mxu1 }
 0xc01   :  { %v1064_v12 = vadd.f32 %v2120_v11, %v1903_v10  ;;  %v1058_v13 = vpop.f32.mrb[9].mxu1 }
 0xc02   :  { %v1059_v1 = vadd.f32 %v1903_v10, %v1058_v13 }
 0xc04   :  { %2125 = vmatprep.mubr.msk.f32.mxu1 %vm195_vm1, %v1059_v1  ;;  %v2760_v14 = vpack.i.bf16 %v1064_v12, %v1059_v1 }
 0xc06   :  { %2346 = vrot.lane.b32.xlu1 %v2760_v14, %s2471_s2  ;;  %2341 = vrot.lane.b32.xlu0 %v2760_v14, %s2472_s23 }
 0xc0a   :  { %1265 = vrot.lane.b32.xlu1 %v1059_v1, %s2473_s24 }
 0xc0e   :  { %1267 = vrot.lane.b32.xlu1 %v1064_v12, %s2473_s24 }
 0xc78   :  { %v2347_v15 = vpop.permute.xlu1 %2346  ;;  %v2342_v16 = vpop.permute.xlu0 %2341 }
 0xc79   :  { %v2349_v17 = vunpack.i.h.bf16 %v2347_v15  ;;  %v2348_v18 = vunpack.i.l.bf16 %v2347_v15  ;;  %v2344_v19 = vunpack.i.h.bf16 %v2342_v16  ;;  %v2343_v35 = vunpack.i.l.bf16 %v2342_v16 }
 0xc7b   :  { %v2258_v33 = vpack.c.bf16 %v2344_v19, %v2343_v35  ;;  %v2268_v21 = vpack.c.bf16 %v2349_v17, %v2348_v18 }
 0xc7c   :  { %v1266_v22 = vpop.permute.xlu1 %1265 }
 0xc7d   :  { %2260 = vmatprep.subr.msk.bf16.mxu1 %vm2595_vm2, %v2258_v33 }
 0xc7e   :  { %2263 = vmatpush3.bf16.xpose.msk.msra.mxu1 %vm2595_vm2, %v2258_v33 }
 0xc7f   :  { %2270 = vmatprep.subr.msk.bf16.mxu1 %vm2595_vm2, %v2268_v21 }
 0xc80   :  { %v1268_v23 = vpop.permute.xlu1 %1267 }
 0xc85   :  { %2126 = vmatmul.mubr.msk.f32.vlgmr.msra.gmra.mrb[10].mxu1 %vm195_vm1, %v1064_v12 }
 0xc86   :  { %2273 = vmatpush3.bf16.xpose.msk.msra.mxu1 %vm2595_vm2, %v2268_v21  ;;  %2139 = vmatprep.mubr.msk.f32.mxu1 %vm195_vm1, %v1266_v22  ;;  %v1918_v21 = vld [vmem:[%s2910_s5 + $0x20] sm:$0xff]  ;;  %v1919_v22 = vld [vmem:[%s2910_s5 + $0x28] sm:$0xff] }
 0xc8d   :  { %2140 = vmatmul.mubr.msk.f32.vlgmr.msra.gmra.mrb[12].mxu1 %vm195_vm1, %v1268_v23  ;;  %v2278_v23 = vpack.c.bf16 %v1919_v22, %v1918_v21  ;;  %v1935_v21 = vld [vmem:[%s2913_s8 + $0x58] sm:$0xff]  ;;  %v1936_v22 = vld [vmem:[%s2913_s8 + $0x60] sm:$0xff] }
 0xd58   :  { %v2127_v24 = vpop.f32.mrb[10].mxu1 }
 0xd59   :  { %v1153_v25 = vadd.f32 %v2127_v24, %v2610_v53  ;;  %v1147_v26 = vpop.f32.mrb[11].mxu1  ;;  %v1920_v24 = vld [vmem:[%s2910_s5 + $0x30] sm:$0xff] }
 0xd5a   :  { %v1148_v27 = vadd.f32 %v1147_v26, %v2612_v54 }
 0xd5b   :  { %v1159_v28 = vsel %vm195_vm1, %v1153_v25, -inf }
 0xd5c   :  { %1160 = vmax.xlane.f32.xlu1 %v1159_v28  ;;  %v1156_v29 = vsel %vm195_vm1, %v1148_v27, -inf }
 0xd5d   :  { %1157 = vmax.xlane.f32.xlu0 %v1156_v29 }
 0xd60   :  { %v2141_v30 = vpop.f32.mrb[12].mxu1 }
 0xd61   :  { %v1347_v48 = vpop.f32.mrb[13].mxu1  ;;  %v1353_v36 = vadd.f32 %v2141_v30, %v2610_v53 }
 0xd62   :  { %v1348_v34 = vadd.f32 %v1347_v48, %v2612_v54 }
 0xd63   :  { %v1359_v38 = vsel %vm195_vm1, %v1353_v36, -inf }
 0xd64   :  { %v1356_v37 = vsel %vm195_vm1, %v1348_v34, -inf }
 0xd65   :  { %1357 = vmax.xlane.f32.xlu0 %v1356_v37 }
 0xd69   :  { %1360 = vmax.xlane.f32.xlu0 %v1359_v38  ;;  %v2820_v38 = vld [vmem:[%s2914_s9 + $0x8] sm:$0x3f] }
 0xde9   :  { %v1161_v39 = vpop.xlane.xlu1 %1160 }
 0xdea   :  { %v1163_v40 = vsub.f32 %v1153_v25, %v1161_v39  ;;  %v1158_v41 = vpop.xlane.xlu0 %1157  ;;  %v1921_v25 = vld [vmem:[%s2910_s5 + $0x38] sm:$0xff]  ;;  %v1483_v39 = vrot.slane %v2820_v38, %v604_v0 }
 0xdeb   :  { %v1162_v43 = vsub.f32 %v1148_v27, %v1158_v41  ;;  %v2282_v26 = vpack.c.bf16 %v1921_v25, %v1920_v24  ;;  %v1937_v24 = vld [vmem:[%s2913_s8 + $0x68] sm:$0xff] }
 0xdec   :  { %v1166_v44 = vmul.f32 1.442695, %v1163_v40  ;;  %v2302_v25 = vpack.c.bf16 %v1937_v24, %v1936_v22 }
 0xded   :  { %v1164_v42 = vmul.f32 1.442695, %v1162_v43 }
 0xdee   :  { %2392 = vpow2.f32 %v1166_v44 }
 0xdef   :  { %2394 = vpow2.f32 %v1164_v42 }
 0xdf2   :  { %v1358_v45 = vpop.xlane.xlu0 %1357 }
 0xdf3   :  { %v1362_v46 = vsub.f32 %v1348_v34, %v1358_v45 }
 0xdf5   :  { %v1364_v47 = vmul.f32 1.442695, %v1362_v46 }
 0xdf6   :  { %v1361_v54 = vpop.xlane.xlu0 %1360 }
 0xdf7   :  { %2396 = vpow2.f32 %v1364_v47  ;;  %v1363_v53 = vsub.f32 %v1353_v36, %v1361_v54 }
 0xdf8   :  { %v2393_v49 = vpop.eup %2392 }
 0xdf9   :  { %v2395_v50 = vpop.eup %2394  ;;  %v1366_v51 = vmul.f32 1.442695, %v1363_v53  ;;  %v1171_v52 = vsel %vm195_vm1, %v2393_v49, 0.0 }
 0xdfa   :  { %1172 = vadd.xlane.f32.xlu1 %v1171_v52  ;;  %v1168_v55 = vsel %vm195_vm1, %v2395_v50, 0.0 }
 0xdfb   :  { %2398 = vpow2.f32 %v1366_v51  ;;  %1169 = vadd.xlane.f32.xlu0 %v1168_v55 }
 0xe01   :  { %v2397_v56 = vpop.eup %2396 }
 0xe02   :  { %v1368_v57 = vsel %vm195_vm1, %v2397_v56, 0.0 }
 0xe03   :  { %1369 = vadd.xlane.f32.xlu0 %v1368_v57  ;;  %v1925_v57 = vld [vmem:[%s2911_s6 + $0x28] sm:$0xff] }
 0xe05   :  { %v2399_v58 = vpop.eup %2398 }
 0xe06   :  { %v1371_v61 = vsel %vm195_vm1, %v2399_v58, 0.0 }
 0xe07   :  { %1372 = vadd.xlane.f32.xlu1 %v1371_v61  ;;  %v1926_v61 = vld [vmem:[%s2911_s6 + $0x30] sm:$0xff] }
 0xe18   :  { %2356 = vrot.lane.b32.xlu1 %v2760_v14, %s2474_s25 }
 0xe19   :  { %2351 = vrot.lane.b32.xlu0 %v2760_v14, %s2475_s26 }
 0xe87   :  { %v1173_v2 = vpop.xlane.xlu1 %1172 }
 0xe88   :  { %v1170_v62 = vpop.xlane.xlu0 %1169 }
 0xe89   :  { %2400 = vrcp.f32 %v1170_v62  ;;  %v1927_v62 = vld [vmem:[%s2911_s6 + $0x38] sm:$0xff] }
 0xe8a   :  { %2402 = vrcp.f32 %v1173_v2  ;;  %v2290_v2 = vpack.c.bf16 %v1927_v62, %v1926_v61 }
 0xe90   :  { %v1370_v3 = vpop.xlane.xlu0 %1369 }
 0xe91   :  { %2404 = vrcp.f32 %v1370_v3 }
 0xe93   :  { %v2401_v4 = vpop.eup %2400 }
 0xe94   :  { %v1373_v5 = vpop.xlane.xlu1 %1372  ;;  %v2352_v6 = vpop.permute.xlu0 %2351  ;;  %v1176_v7 = vmul.f32 %v2401_v4, %v2395_v50 }
 0xe95   :  { %2406 = vrcp.f32 %v1373_v5  ;;  %v2354_v10 = vunpack.i.h.bf16 %v2352_v6  ;;  %v2353_v11 = vunpack.i.l.bf16 %v2352_v6  ;;  %v2403_v13 = vpop.eup %2402 }
 0xe96   :  { %2132 = vmatprep.mubr.msk.f32.mxu0 %vm195_vm1, %v1176_v7  ;;  %v1177_v17 = vmul.f32 %v2403_v13, %v2393_v49 }
 0xe97   :  { %v2264_v12 = vpack.c.bf16 %v2354_v10, %v2353_v11  ;;  %v1596_v11 = vrot.slane %v2820_v38, %v717_v31  ;;  %v1932_v31 = vld [vmem:[%s2913_s8 + $0x40] sm:$0xff] }
 0xe98   :  { %v2357_v1 = vpop.permute.xlu1 %2356 }
 0xe99   :  { %v2359_v15 = vunpack.i.h.bf16 %v2357_v1  ;;  %v2358_v14 = vunpack.i.l.bf16 %v2357_v1  ;;  %2265 = vmatprep.subr.bf16.mxu0 %v2264_v12  ;;  %v1602_v1 = vrot.slane %v2820_v38, %v723_v32  ;;  %v1934_v32 = vld [vmem:[%s2913_s8 + $0x50] sm:$0xff] }
 0xe9a   :  { %2267 = vmatpush3.bf16.msra.mxu0 %v2264_v12 }
 0xe9b   :  { %v2405_v16 = vpop.eup %2404  ;;  %v2274_v18 = vpack.c.bf16 %v2359_v15, %v2358_v14 }
 0xe9c   :  { %v1376_v19 = vmul.f32 %v2405_v16, %v2397_v56 }
 0xe9d   :  { %2133 = vmatmul.mubr.msk.f32.vlgmr.msra.gmra.mrb[8].mxu0 %vm195_vm1, %v1177_v17  ;;  %2275 = vmatprep.subr.bf16.mxu0 %v2274_v18 }
 0xe9e   :  { %2277 = vmatpush3.bf16.msra.mxu0 %v2274_v18  ;;  %2146 = vmatprep.mubr.msk.f32.mxu0 %vm195_vm1, %v1376_v19 }
 0xe9f   :  { %v2407_v35 = vpop.eup %2406  ;;  %2279 = vmatprep.subr.bf16.mxu0 %v2278_v23 }
 0xea0   :  { %v1377_v33 = vmul.f32 %v2407_v35, %v2399_v58  ;;  %v1933_v35 = vld [vmem:[%s2913_s8 + $0x48] sm:$0xff] }
 0xea2   :  { %2147 = vmatmul.mubr.msk.f32.vlgmr.msra.gmra.mrb[10].mxu0 %vm195_vm1, %v1377_v33  ;;  %v2294_v33 = vpack.c.bf16 %v1933_v35, %v1932_v31  ;;  %v1842_v31 = vrot.slane %v2820_v38, %v961_v59 }
 0xea3   :  { %2281 = vmatpush3.bf16.msra.mxu0 %v2278_v23  ;;  %v2298_v23 = vpack.c.bf16 %v1935_v21, %v1934_v32  ;;  %v1848_v21 = vrot.slane %v2820_v38, %v967_v60 }
 0xea4   :  { %2283 = vmatprep.subr.bf16.mxu0 %v2282_v26 }
 0xea7   :  { %2285 = vmatpush3.bf16.msra.mxu0 %v2282_v26  ;;  %v1938_v26 = vld [vmem:[%s2913_s8 + $0x70] sm:$0xff] }
 0xea8   :  { %2295 = vmatprep.subr.bf16.mxu0 %v2294_v33 }
 0xf70   :  { %v2134_v27 = vpop.f32.mrb[8].mxu0 }
 0xf71   :  { %v1256_v28 = vpop.f32.mrb[9].mxu0 }
 0xf75   :  { %v2148_v29 = vpop.f32.mrb[10].mxu0 }
 0xf76   :  { %v1456_v30 = vpop.f32.mrb[11].mxu0 }
 0xf77   :  { %1467 = vrot.lane.b32.xlu1 %v1456_v30, %s2476_s13 }
 0xf7b   :  { %1469 = vrot.lane.b32.xlu1 %v2148_v29, %s2476_s13  ;;  %v1929_v29 = vld [vmem:[%s2912_s7 + $0x1] ss:$0 sm:$0xff]  ;;  %s2477_s7 = smov [#allocation5]  }
 0xfe9   :  { %v1468_v48 = vpop.permute.xlu1 %1467 }
 0xfea   :  { %v1473_v34 = vsel %vm195_vm1, %v1256_v28, %v1468_v48 }
 0xfeb   :  { %2157 = vmatprep.mubr.msk.f32.mxu0 %vm56_vm0, %v1473_v34 }
 0xfed   :  { %v1470_v36 = vpop.permute.xlu1 %1469 }
 0xfee   :  { %v1474_v37 = vsel %vm195_vm1, %v2134_v27, %v1470_v36  ;;  %v1939_v27 = vld [vmem:[%s2913_s8 + $0x78] sm:$0xff]  ;;  %s1864_s8 = sshll.u32 %s2477_s7, 4  ;;  %s1865_s8 = int_to_ptr.vmem [resolvable:$true] %s1864_s8 }
 0xfef   :  { %2158 = vmatmul.mubr.msk.f32.vlgmr.msra.gmra.mrb[12].mxu0 %vm56_vm0, %v1474_v37  ;;  %v2306_v28 = vpack.c.bf16 %v1939_v27, %v1938_v26  ;;  %s2442_s5 = scalar_lea.vmem %s1865_s8, 32  ;;  %p2447_p9 = scmp.lt.s32.totalorder %s1865_s8, %s1865_s8 }
 0xff0   :  { %2297 = vmatpush3.bf16.msra.mxu0 %v2294_v33  ;;  %p2443_p8 = scmp.ne.s32.totalorder %s1865_s8, %s2442_s5  ;;  %p2448_p10 = scmp.lt.s32.totalorder %s2442_s5, %s2442_s5 }
 0xff1   :  { %2299 = vmatprep.subr.bf16.mxu0 %v2298_v23 }
 0xff2   :  { %p2449_p11 = por %p2448_p10, %p2447_p9 }
 0xff4   :  { %2301 = vmatpush3.bf16.msra.mxu0 %v2298_v23  ;;  %p2450_p12 = pnand %p2449_p11, %p2443_p8 }
 0xff5   :  { %2303 = vmatprep.subr.bf16.mxu0 %v2302_v25 }
 0xff8   :  { %2305 = vmatpush3.bf16.msra.mxu0 %v2302_v25 }
 0xff9   :  { %2307 = vmatprep.subr.bf16.mxu0 %v2306_v28 }
 0xffc   :  { %2309 = vmatpush3.bf16.msra.mxu0 %v2306_v28 }
0x10c2   :  { %v2159_v40 = vpop.f32.mrb[12].mxu0 }
0x10c3   :  { %v1562_v41 = vadd.f32 %v2159_v40, %v1483_v39  ;;  %v1556_v43 = vpop.f32.mrb[13].mxu0 }
0x10c4   :  { %v1557_v44 = vadd.f32 %v1556_v43, %v1483_v39 }
0x10c5   :  { %v1566_v42 = vadd.f32 %v1562_v41, %v2750_v9 }
0x10c6   :  { %v1565_v45 = vadd.f32 %v1557_v44, %v2748_v8  ;;  %v1924_v8 = vld [vmem:[%s2911_s6 + $0x20] sm:$0xff] }
0x10c7   :  { %v1570_v46 = vsel %vm56_vm0, %v1566_v42, 0.0  ;;  %v2286_v58 = vpack.c.bf16 %v1925_v57, %v1924_v8 }
0x10c8   :  { %1571 = vadd.xlane.f32.xlu1 %v1570_v46  ;;  %v1567_v47 = vsel %vm56_vm0, %v1565_v45, 0.0 }
0x10c9   :  { %1568 = vadd.xlane.f32.xlu0 %v1567_v47  ;;  %2287 = vmatprep.subr.bf16.mxu1 %v2286_v58 }
0x10ca   :  { %2289 = vmatpush3.bf16.msra.mxu1 %v2286_v58 }
0x10cb   :  { %2291 = vmatprep.subr.bf16.mxu1 %v2290_v2 }
0x10ce   :  { %2293 = vmatpush3.bf16.msra.mxu1 %v2290_v2 }
0x1155   :  { %v1572_v54 = vpop.xlane.xlu1 %1571 }
0x1156   :  { %v1574_v53 = vmul.f32 0.03125, %v1572_v54  ;;  %v1569_v49 = vpop.xlane.xlu0 %1568 }
0x1157   :  { %v1573_v50 = vmul.f32 0.03125, %v1569_v49 }
0x1158   :  { %v1576_v51 = vsub.f32 %v1566_v42, %v1574_v53 }
0x1159   :  { %v1575_v0 = vsub.f32 %v1565_v45, %v1573_v50 }
0x115a   :  { %v1578_v56 = vmul.f32 %v1576_v51, %v1576_v51 }
0x115b   :  { %v1577_v52 = vmul.f32 %v1575_v0, %v1575_v0 }
0x115c   :  { %v1582_v9 = vsel %vm56_vm0, %v1578_v56, 0.0  ;;  %v1729_v56 = vrot.slane %v2820_v38, %v847_v20 }
0x115d   :  { %v1579_v55 = vsel %vm56_vm0, %v1577_v52, 0.0 }
0x115e   :  { %1580 = vadd.xlane.f32.xlu0 %v1579_v55 }
0x1162   :  { %1583 = vadd.xlane.f32.xlu0 %v1582_v9 }
0x11eb   :  { %v1581_v3 = vpop.xlane.xlu0 %1580 }
0x11ec   :  { %v1585_v4 = vmul.f32 0.03125, %v1581_v3 }
0x11ee   :  { %v1587_v5 = vadd.f32 1e-12, %v1585_v4 }
0x11ef   :  { %v1584_v6 = vpop.xlane.xlu0 %1583 }
0x11f0   :  { %2408 = vrsqrt.f32 %v1587_v5  ;;  %v1586_v7 = vmul.f32 0.03125, %v1584_v6 }
0x11f2   :  { %v1588_v10 = vadd.f32 1e-12, %v1586_v7 }
0x11f4   :  { %2410 = vrsqrt.f32 %v1588_v10 }
0x11fa   :  { %v2409_v12 = vpop.eup %2408 }
0x11fb   :  { %v1591_v13 = vmul.f32 %v2409_v12, %v1575_v0 }
0x11fd   :  { %v1597_v15 = vmul.f32 %v1596_v11, %v1591_v13 }
0x11fe   :  { %v2411_v14 = vpop.eup %2410 }
0x11ff   :  { %v1592_v16 = vmul.f32 %v2411_v14, %v1576_v51  ;;  %v1603_v17 = vadd.f32 %v1602_v1, %v1597_v15 }
0x1201   :  { %v1598_v18 = vmul.f32 %v1596_v11, %v1592_v16  ;;  %2168 = vmatprep.mubr.msk.f32.mxu1 %vm56_vm0, %v1603_v17 }
0x1203   :  { %v1604_v19 = vadd.f32 %v1602_v1, %v1598_v18 }
0x1205   :  { %2169 = vmatmul.mubr.msk.f32.vlgmr.msra.gmra.mrb[14].mxu1 %vm56_vm0, %v1604_v19 }
0x12d8   :  { %v2170_v30 = vpop.f32.mrb[14].mxu1 }
0x12d9   :  { %v1696_v48 = vadd.f32 %v2170_v30, %v1929_v29  ;;  %v1690_v34 = vpop.f32.mrb[15].mxu1 }
0x12da   :  { %v1691_v36 = vadd.f32 %v1929_v29, %v1690_v34 }
0x12db   :  { %v1702_v37 = vmul.f32 0.044715, %v1696_v48  ;;  %v1700_v0 = vmul.f32 0.5, %v1696_v48 }
0x12dc   :  { %v1701_v39 = vmul.f32 0.044715, %v1691_v36  ;;  %v1699_v50 = vmul.f32 0.5, %v1691_v36 }
0x12dd   :  { %v1704_v40 = vmul.f32 %v1702_v37, %v1696_v48 }
0x12de   :  { %v1703_v41 = vmul.f32 %v1701_v39, %v1691_v36 }
0x12df   :  { %v1706_v43 = vmul.f32 %v1704_v40, %v1696_v48 }
0x12e0   :  { %v1705_v44 = vmul.f32 %v1703_v41, %v1691_v36 }
0x12e1   :  { %v1708_v42 = vadd.f32 %v1706_v43, %v1696_v48 }
0x12e2   :  { %v1707_v45 = vadd.f32 %v1705_v44, %v1691_v36 }
0x12e3   :  { %v1710_v46 = vmul.f32 0.7978846, %v1708_v42 }
0x12e4   :  { %v1709_v47 = vmul.f32 0.7978846, %v1707_v45 }
0x12e5   :  { %2412 = vtanh.f32 %v1710_v46 }
0x12e6   :  { %2414 = vtanh.f32 %v1709_v47 }
0x12ef   :  { %v2413_v54 = vpop.eup %2412 }
0x12f0   :  { %v2415_v53 = vpop.eup %2414  ;;  %v1714_v49 = vadd.f32 1.0, %v2413_v54 }
0x12f1   :  { %v1713_v51 = vadd.f32 1.0, %v2415_v53 }
0x12f2   :  { %v1716_v55 = vmul.f32 %v1714_v49, %v1700_v0 }
0x12f3   :  { %v1715_v52 = vmul.f32 %v1713_v51, %v1699_v50 }
0x12f5   :  { %2187 = vmatprep.mubr.msk.f32.mxu0 %vm849_vm3, %v1715_v52 }
0x12f6   :  { %2188 = vmatmul.mubr.msk.f32.vlgmr.msra.gmra.mrb[14].mxu0 %vm849_vm3, %v1716_v55 }
0x13c9   :  { %v2189_v9 = vpop.f32.mrb[14].mxu0 }
0x13ca   :  { %v1808_v8 = vadd.f32 %v2189_v9, %v1729_v56  ;;  %v1802_v57 = vpop.f32.mrb[15].mxu0 }
0x13cb   :  { %v1803_v58 = vadd.f32 %v1802_v57, %v1729_v56 }
0x13cc   :  { %v1812_v61 = vadd.f32 %v1808_v8, %v1604_v19 }
0x13cd   :  { %v1811_v62 = vadd.f32 %v1803_v58, %v1603_v17 }
0x13ce   :  { %v1816_v2 = vsel %vm56_vm0, %v1812_v61, 0.0 }
0x13cf   :  { %1817 = vadd.xlane.f32.xlu0 %v1816_v2  ;;  %v1813_v3 = vsel %vm56_vm0, %v1811_v62, 0.0 }
0x13d0   :  { %1814 = vadd.xlane.f32.xlu1 %v1813_v3 }
0x145c   :  { %v1818_v4 = vpop.xlane.xlu0 %1817 }
0x145d   :  { %v1820_v5 = vmul.f32 0.03125, %v1818_v4  ;;  %v1815_v6 = vpop.xlane.xlu1 %1814 }
0x145e   :  { %v1819_v7 = vmul.f32 0.03125, %v1815_v6 }
0x145f   :  { %v1822_v10 = vsub.f32 %v1812_v61, %v1820_v5 }
0x1460   :  { %v1821_v11 = vsub.f32 %v1811_v62, %v1819_v7 }
0x1461   :  { %v1824_v12 = vmul.f32 %v1822_v10, %v1822_v10 }
0x1462   :  { %v1823_v20 = vmul.f32 %v1821_v11, %v1821_v11 }
0x1463   :  { %v1828_v13 = vsel %vm56_vm0, %v1824_v12, 0.0 }
0x1464   :  { %1829 = vadd.xlane.f32.xlu0 %v1828_v13  ;;  %v1825_v1 = vsel %vm56_vm0, %v1823_v20, 0.0 }
0x1465   :  { %1826 = vadd.xlane.f32.xlu1 %v1825_v1 }
0x14f1   :  { %v1830_v15 = vpop.xlane.xlu0 %1829 }
0x14f2   :  { %v1832_v14 = vmul.f32 0.03125, %v1830_v15  ;;  %v1827_v16 = vpop.xlane.xlu1 %1826 }
0x14f3   :  { %v1831_v17 = vmul.f32 0.03125, %v1827_v16 }
0x14f4   :  { %v1834_v18 = vadd.f32 1e-12, %v1832_v14 }
0x14f5   :  { %v1833_v19 = vadd.f32 1e-12, %v1831_v17 }
0x14f6   :  { %2416 = vrsqrt.f32 %v1834_v18 }
0x14f7   :  { %2418 = vrsqrt.f32 %v1833_v19 }
0x1500   :  { %v2417_v35 = vpop.eup %2416 }
0x1501   :  { %v2419_v33 = vpop.eup %2418  ;;  %v1838_v32 = vmul.f32 %v2417_v35, %v1822_v10 }
0x1502   :  { %v1837_v22 = vmul.f32 %v2419_v33, %v1821_v11 }
0x1503   :  { %v1844_v23 = vmul.f32 %v1842_v31, %v1838_v32 }
0x1504   :  { %v1843_v24 = vmul.f32 %v1842_v31, %v1837_v22 }
0x1505   :  { %v1850_v25 = vadd.f32 %v1848_v21, %v1844_v23 }
0x1506   :  { %v1849_v26 = vadd.f32 %v1848_v21, %v1843_v24 }
0x1507   :  { %v1852_v27 = vrot.slane %v1850_v25, 7 }
0x1509   :  { %v1855_v28 = vsel %vm1854_vm4, %v1849_v26, %v1852_v27 }
0x150a   :  { %1857 = vst.msk [vmem:[#allocation5] sm:$0x3] %vm1856_vm5, %v1855_v28 }
0x150b   :  { %2453 = shalt.err (!%p2450_p12)
}
0x150c   :  { %s2454_s13 = scalar_lea.hbm %s2915_s10, 32 }
0x150d   :  { %p2455_p13 = scmp.ne.s32.totalorder %s2915_s10, %s2454_s13  ;;  %p2458_p0 = scmp.lt.u32.totalorder %s2454_s13, %s2915_s10 }
0x150f   :  { %p2460_p1 = pnand %p2458_p0, %p2455_p13 }
0x1511   :  { %2463 = shalt.err (!%p2460_p1)
}
0x1512   :  { %1867 = dma.vmem_to_hbm [thread:$0]  %s1865_s8, 32, %s2915_s10, [#allocation4]  }
0x1513   :  { %2466 = dma.done.wait [#allocation4], 32  }
0x1514   :  { %2467 = vsyncadd [#allocation4], 4294967264 }
0x1515   :  { %1871 = vsyncpa [#allocation3], 1 }
0x1516   :  { %1872 = vsyncpa [#allocation4], 1 }

</bundles_post_ra>
